<compile_context>
chip_gen: v5e
topology: v5e:2x2
jax: 0.10.0
libtpu: 0.0.40
codegen_flags: <defaults>
</compile_context>

<pallas_src>
import functools

import numpy as np
import jax
import jax.numpy as jnp
from jax.experimental import pallas as pl
from jax.experimental.pallas import tpu as pltpu


# -----------------------------------------------------------------------------
# Module configuration (mirrors the defaults of the PyTorch LossWrapper)
# -----------------------------------------------------------------------------
BLOCK_CFG = [
    # (avgpool_before, cin, cout) -- synthetic VGG-like stack, 5 blocks
    (False, 3, 8),
    (True, 8, 16),
    (True, 16, 16),
    (True, 16, 16),
    (True, 16, 16),
]

FULL_NET_NAMES = ["vgg19_imagenet_pytorch", "vgg16_face_caffe"]
NAMES = [["VGG19", "VGGFace"]]
APPLY_TO = [("pred_target_imgs_lf_detached", "target_imgs")]
LOSS_WEIGHTS = [10.0, 0.01]
LAYER_WEIGHTS = [0.03125, 0.0625, 0.125, 0.25, 1.0]


def _round_up(x, m):
    return (x + m - 1) // m * m


# -----------------------------------------------------------------------------
# Fully-fused Pallas kernel: one grid step = one net (all images, fake + real,
# all 5 blocks). Layout: rows = stacked image slots of height `hb` (8-aligned,
# fake images first then real, +2 trailing pad rows), lanes = (padded_w, C).
# -----------------------------------------------------------------------------
def _fused_perceptual_kernel(x_ref, *refs, meta, coeffs):
    n_blocks = len(meta)
    wts = [refs[2 * b] for b in range(n_blocks)]
    biases = [refs[2 * b + 1] for b in range(n_blocks)]
    off = 2 * n_blocks
    prows = [refs[off + 2 * b] for b in range(n_blocks - 1)]
    pcols = [refs[off + 2 * b + 1] for b in range(n_blocks - 1)]
    loss_ref = refs[off + 2 * (n_blocks - 1)]

    x = x_ref[0]                                  # (R_in0, (W+2)*Cin) bf16
    total = jnp.zeros((1, 1), jnp.float32)

    for b, (hc, hb, half, r_out) in enumerate(meta):
        # 3x3 'same' conv as 3 row-shifted matmuls against block-Toeplitz weights
        # (bf16 MXU operands, f32 accumulation), then bias + ReLU in f32.
        acc = jnp.dot(x[0:r_out, :], wts[b][0, 0],
                      preferred_element_type=jnp.float32)
        for dy in (1, 2):
            acc = acc + jnp.dot(x[dy:dy + r_out, :], wts[b][0, dy],
                                preferred_element_type=jnp.float32)
        feat = jnp.maximum(acc + biases[b][0], 0.0)        # (r_out, wc*cout) f32

        # Masked L1 partial: fake rows are the first half, real rows the second.
        # Rows with (row % hb) >= hc are image-slot boundary junk -> masked out.
        diff = jnp.abs(feat[:half, :] - feat[half:, :])
        row = jax.lax.broadcasted_iota(jnp.int32, (half, 1), 0)
        diff = jnp.where((row % hb) < hc, diff, 0.0)
        part = jnp.sum(jnp.sum(diff, axis=1, keepdims=True),
                       axis=0, keepdims=True)
        total = total + part * coeffs[b]          # layer_weight / (n*h*w*c) folded

        if b + 1 < n_blocks:
            # 2x2 avgpool + per-image zero re-padding for the next block, as two
            # small bf16 matmuls (the 0/0.5 pool matrices also drop junk rows).
            fb = feat.astype(jnp.bfloat16)
            pooled = jnp.dot(fb, pcols[b][...],
                             preferred_element_type=jnp.float32)
            x = jnp.dot(prows[b][...], pooled.astype(jnp.bfloat16),
                        preferred_element_type=jnp.float32).astype(jnp.bfloat16)

    loss_ref[0] = total


def fused_perceptual_call(x_packed, wt_list, bias_list, prow_list, pcol_list,
                          meta, coeffs):
    n_nets = x_packed.shape[0]

    in_specs = [pl.BlockSpec((1,) + x_packed.shape[1:], lambda i: (i, 0, 0))]
    inputs = [x_packed]
    for wt, bias in zip(wt_list, bias_list):
        in_specs.append(pl.BlockSpec((1,) + wt.shape[1:], lambda i: (i, 0, 0, 0)))
        in_specs.append(pl.BlockSpec((1,) + bias.shape[1:], lambda i: (i, 0, 0)))
        inputs.extend([wt, bias])
    for prow, pcol in zip(prow_list, pcol_list):       # shared between nets
        in_specs.append(pl.BlockSpec(prow.shape, lambda i: (0, 0)))
        in_specs.append(pl.BlockSpec(pcol.shape, lambda i: (0, 0)))
        inputs.extend([prow, pcol])

    kernel = functools.partial(_fused_perceptual_kernel, meta=meta, coeffs=coeffs)
    out = pl.pallas_call(
        kernel,
        out_shape=jax.ShapeDtypeStruct((n_nets, 1, 1), jnp.float32),
        grid=(n_nets,),
        in_specs=in_specs,
        out_specs=pl.BlockSpec((1, 1, 1), lambda i: (i, 0, 0)),
        compiler_params=pltpu.CompilerParams(
            dimension_semantics=("parallel",),
            vmem_limit_bytes=8 * 1024 * 1024,
        ),
    )(*inputs)
    return out.reshape(n_nets)


# -----------------------------------------------------------------------------
# Init-time operand construction (pure host-side glue, done once)
# -----------------------------------------------------------------------------
def init_net_params(key):
    params = []
    for (_, cin, cout) in BLOCK_CFG:
        key, k_w, k_b = jax.random.split(key, 3)
        scale = (2.0 / (9.0 * cin)) ** 0.5
        w = jax.random.normal(k_w, (3, 3, cin, cout), jnp.float32) * scale
        b = jax.random.normal(k_b, (cout,), jnp.float32) * 0.01
        params.append((w, b))
    return params


def make_norm_buffers():
    # Same constants as the PyTorch module, laid out for NHWC broadcasting.
    mean_in = (jnp.array([0.485, 0.456, 0.406], jnp.float32) * 2.0 - 1.0).reshape(1, 1, 1, 3)
    std_in = (jnp.array([0.229, 0.224, 0.225], jnp.float32) * 2.0).reshape(1, 1, 1, 3)
    mean_cf = (jnp.array([103.939, 116.779, 123.68], jnp.float32) / 127.5 - 1.0).reshape(1, 1, 1, 3)
    std_cf = (jnp.ones((3,), jnp.float32) / 127.5).reshape(1, 1, 1, 3)
    return [mean_in, mean_cf], [std_in, std_cf]


def _toeplitz_conv_weights(w, wc):
    """(3,3,Cin,Cout) -> (3, (wc+2)*Cin, wc*Cout) block-Toeplitz matrices (one per dy)."""
    _, _, cin, cout = w.shape
    wt = np.zeros((3, (wc + 2) * cin, wc * cout), np.float32)
    for dy in range(3):
        for wo in range(wc):
            for dx in range(3):
                wp = wo + dx  # column index in the zero-padded packed row
                wt[dy, wp * cin:(wp + 1) * cin, wo * cout:(wo + 1) * cout] = w[dy, dx]
    return wt


def build_block_operands(nets_params, h, w, n_imgs):
    """Per-block Toeplitz weights / biases (per net), pool matrices (shared) and
    static metadata (row pitch, valid height, etc.) for the fused kernel."""
    n_stack = 2 * n_imgs                     # fake + real images stacked along rows
    wt_list, bias_list, prow_list, pcol_list = [], [], [], []
    meta, coeffs = [], []
    hc, wc = h, w
    prev = None                              # (hc, hb, wc, cout) of previous block
    for blk, (pool_before, cin, cout) in enumerate(BLOCK_CFG):
        if blk > 0:
            assert pool_before, "kernel layout assumes avgpool before every block > 0"
        if pool_before:
            hc //= 2
            wc //= 2
        hb = _round_up(hc + 2, 8)            # 8-aligned per-image row pitch
        r_out = n_stack * hb
        half = n_imgs * hb

        wt = np.stack([_toeplitz_conv_weights(np.asarray(p[blk][0]), wc)
                       for p in nets_params])               # (2, 3, (wc+2)cin, wc*cout)
        bias = np.stack([np.tile(np.asarray(p[blk][1]), wc)[None]
                         for p in nets_params])             # (2, 1, wc*cout)
        wt_list.append(jnp.asarray(wt, jnp.bfloat16))
        bias_list.append(jnp.asarray(bias, jnp.float32))

        if pool_before:
            hc_p, hb_p, wc_p, cout_p = prev
            # Row pooling (+ per-image zero padding, + junk-row dropping):
            #   (n_stack*hb + 2, n_stack*hb_p), applied as prow @ features.
            prow = np.zeros((n_stack * hb + 2, n_stack * hb_p), np.float32)
            for i in range(n_stack):
                for j in range(hc):
                    prow[i * hb + 1 + j, i * hb_p + 2 * j] = 0.5
                    prow[i * hb + 1 + j, i * hb_p + 2 * j + 1] = 0.5
            # Lane pooling over packed (w, c) + zero-pad pixel on each side:
            #   (wc_p*cout_p, (wc+2)*cin), applied as features @ pcol.
            pcol = np.zeros((wc_p * cout_p, (wc + 2) * cin), np.float32)
            for wp in range(wc_p):
                for ci in range(cout_p):
                    pcol[wp * cout_p + ci, (wp // 2 + 1) * cin + ci] = 0.5
            prow_list.append(jnp.asarray(prow, jnp.bfloat16))   # 0/0.5: bf16-exact
            pcol_list.append(jnp.asarray(pcol, jnp.bfloat16))

        meta.append((hc, hb, half, r_out))
        coeffs.append(LAYER_WEIGHTS[blk] / float(n_imgs * hc * wc * cout))
        prev = (hc, hb, wc, cout)
    return wt_list, bias_list, prow_list, pcol_list, tuple(meta), tuple(coeffs)


# -----------------------------------------------------------------------------
# Forward (mirrors LossWrapper.forward / forward_extractor)
# -----------------------------------------------------------------------------
def _pack_and_normalize(fake_nchw, real_nchw, mean_list, std_list, hb0):
    """NCHW fake/real -> per-net normalized, lane-dense (rows, (W+2)*C) layout with
    fake images then real images stacked along rows in hb0-row zero-padded slots."""
    imgs = jnp.concatenate([fake_nchw, real_nchw], axis=0)    # (2*n_imgs, C, H, W)
    x = jnp.transpose(imgs, (0, 2, 3, 1))                     # NHWC
    per_net = []
    for m, s in zip(mean_list, std_list):
        xn = (x - m) / s
        n, hh, ww, cc = xn.shape
        xp = jnp.pad(xn, ((0, 0), (1, hb0 - hh - 1), (1, 1), (0, 0)))
        xp = xp.reshape(n * hb0, (ww + 2) * cc)
        xp = jnp.pad(xp, ((0, 2), (0, 0)))                    # 2 trailing pad rows
        per_net.append(xp)
    return jnp.stack(per_net, axis=0).astype(jnp.bfloat16)    # (2, R_in0, (W+2)*C)


@functools.partial(jax.jit, static_argnames=("meta", "coeffs"))
def _perceptual_losses(fake_nchw, real_nchw, wt_list, bias_list, prow_list,
                       pcol_list, mean_list, std_list, *, meta, coeffs):
    x_packed = _pack_and_normalize(fake_nchw, real_nchw, mean_list, std_list,
                                   hb0=meta[0][1])
    return fused_perceptual_call(x_packed, wt_list, bias_list, prow_list,
                                 pcol_list, meta, coeffs)


def loss_wrapper_forward(data_dict, losses_dict, operands, means, stds):
    wt_list, bias_list, prow_list, pcol_list, meta, coeffs = operands
    for i, (tensor_name, target_tensor_name) in enumerate(APPLY_TO):
        real_imgs = data_dict[target_tensor_name]
        fake_imgs = data_dict[tensor_name]
        b, t, c, h, w = real_imgs.shape
        real_imgs = real_imgs.reshape(-1, c, h, w)
        fake_imgs = fake_imgs.reshape(-1, c, h, w)
        # torch.no_grad() on the real branch only affects gradients, not values.
        per_net = _perceptual_losses(fake_imgs, real_imgs, wt_list, bias_list,
                                     prow_list, pcol_list, means, stds,
                                     meta=meta, coeffs=coeffs)
        for n, name in enumerate(NAMES[i]):
            losses_dict[f"G_{name}"] = per_net[n] * LOSS_WEIGHTS[n]
    return losses_dict


# -----------------------------------------------------------------------------
# Main
# -----------------------------------------------------------------------------
if __name__ == "__main__":
    key = jax.random.PRNGKey(0)
    k_params0, k_params1, k_real, k_fake = jax.random.split(key, 4)

    # Deterministic synthetic parameters for the two extractor networks.
    nets_params = [init_net_params(k_params0), init_net_params(k_params1)]
    means, stds = make_norm_buffers()

    # Inputs in (b, t, c, h, w), values roughly in [-1, 1] as the module expects.
    b, t, c, h, w = 2, 1, 3, 16, 16
    data_dict = {
        "target_imgs": jax.random.uniform(k_real, (b, t, c, h, w), jnp.float32,
                                          minval=-1.0, maxval=1.0),
        "pred_target_imgs_lf_detached": jax.random.uniform(k_fake, (b, t, c, h, w),
                                                           jnp.float32,
                                                           minval=-1.0, maxval=1.0),
    }

    operands = build_block_operands(nets_params, h, w, n_imgs=b * t)

    losses_dict = loss_wrapper_forward(data_dict, {}, operands, means, stds)
    for v in losses_dict.values():
        jax.block_until_ready(v)

    assert set(losses_dict.keys()) == {"G_VGG19", "G_VGGFace"}
    assert all(jnp.isfinite(v) for v in losses_dict.values())
    print("KERNEL_OK")
</pallas_src>

<mosaic_0001>
module attributes {stable_mosaic.version = 11 : i64} {
  func.func @_fused_perceptual_kernel(%arg0: i32, %arg1: memref<1x98x54xbf16, #tpu.memory_space<vmem>>, %arg2: memref<1x3x54x128xbf16, #tpu.memory_space<vmem>>, %arg3: memref<1x1x128xf32, #tpu.memory_space<vmem>>, %arg4: memref<1x3x80x128xbf16, #tpu.memory_space<vmem>>, %arg5: memref<1x1x128xf32, #tpu.memory_space<vmem>>, %arg6: memref<1x3x96x64xbf16, #tpu.memory_space<vmem>>, %arg7: memref<1x1x64xf32, #tpu.memory_space<vmem>>, %arg8: memref<1x3x64x32xbf16, #tpu.memory_space<vmem>>, %arg9: memref<1x1x32xf32, #tpu.memory_space<vmem>>, %arg10: memref<1x3x48x16xbf16, #tpu.memory_space<vmem>>, %arg11: memref<1x1x16xf32, #tpu.memory_space<vmem>>, %arg12: memref<66x96xbf16, #tpu.memory_space<vmem>>, %arg13: memref<128x80xbf16, #tpu.memory_space<vmem>>, %arg14: memref<34x64xbf16, #tpu.memory_space<vmem>>, %arg15: memref<128x96xbf16, #tpu.memory_space<vmem>>, %arg16: memref<34x32xbf16, #tpu.memory_space<vmem>>, %arg17: memref<64x64xbf16, #tpu.memory_space<vmem>>, %arg18: memref<34x32xbf16, #tpu.memory_space<vmem>>, %arg19: memref<32x48xbf16, #tpu.memory_space<vmem>>, %arg20: memref<1x1x1xf32, #tpu.memory_space<vmem>>) attributes {dimension_semantics = [#tpu.dimension_semantics<parallel>], iteration_bounds = array<i64: 2>, scalar_prefetch = 0 : i64, scratch_operands = 0 : i64, tpu.core_type = #tpu.core_type<tc>, window_params = [{transform_indices = @transform_0, window_bounds = array<i64: 1, 98, 54>}, {transform_indices = @transform_1, window_bounds = array<i64: 1, 3, 54, 128>}, {transform_indices = @transform_2, window_bounds = array<i64: 1, 1, 128>}, {transform_indices = @transform_3, window_bounds = array<i64: 1, 3, 80, 128>}, {transform_indices = @transform_4, window_bounds = array<i64: 1, 1, 128>}, {transform_indices = @transform_5, window_bounds = array<i64: 1, 3, 96, 64>}, {transform_indices = @transform_6, window_bounds = array<i64: 1, 1, 64>}, {transform_indices = @transform_7, window_bounds = array<i64: 1, 3, 64, 32>}, {transform_indices = @transform_8, window_bounds = array<i64: 1, 1, 32>}, {transform_indices = @transform_9, window_bounds = array<i64: 1, 3, 48, 16>}, {transform_indices = @transform_10, window_bounds = array<i64: 1, 1, 16>}, {pipeline_mode = #tpu.pipeline_mode<synchronous>, transform_indices = @transform_11, window_bounds = array<i64: 66, 96>}, {pipeline_mode = #tpu.pipeline_mode<synchronous>, transform_indices = @transform_12, window_bounds = array<i64: 128, 80>}, {pipeline_mode = #tpu.pipeline_mode<synchronous>, transform_indices = @transform_13, window_bounds = array<i64: 34, 64>}, {pipeline_mode = #tpu.pipeline_mode<synchronous>, transform_indices = @transform_14, window_bounds = array<i64: 128, 96>}, {pipeline_mode = #tpu.pipeline_mode<synchronous>, transform_indices = @transform_15, window_bounds = array<i64: 34, 32>}, {pipeline_mode = #tpu.pipeline_mode<synchronous>, transform_indices = @transform_16, window_bounds = array<i64: 64, 64>}, {pipeline_mode = #tpu.pipeline_mode<synchronous>, transform_indices = @transform_17, window_bounds = array<i64: 34, 32>}, {pipeline_mode = #tpu.pipeline_mode<synchronous>, transform_indices = @transform_18, window_bounds = array<i64: 32, 48>}, {transform_indices = @transform_19, window_bounds = array<i64: 1, 1, 1>}]} {
    %c0 = arith.constant 0 : index
    %c0_0 = arith.constant 0 : index
    %c0_1 = arith.constant 0 : index
    %0 = vector.load %arg1[%c0, %c0_0, %c0_1] : memref<1x98x54xbf16, #tpu.memory_space<vmem>>, vector<1x98x54xbf16>
    %1 = vector.shape_cast %0 : vector<1x98x54xbf16> to vector<98x54xbf16>
    %cst = arith.constant 0.000000e+00 : f32
    %2 = vector.broadcast %cst : f32 to vector<1x1xf32>
    %3 = vector.extract_strided_slice %1 {offsets = [0, 0], sizes = [96, 54], strides = [1, 1]} : vector<98x54xbf16> to vector<96x54xbf16>
    %c0_2 = arith.constant 0 : index
    %c0_3 = arith.constant 0 : index
    %c0_4 = arith.constant 0 : index
    %c0_5 = arith.constant 0 : index
    %4 = vector.load %arg2[%c0_2, %c0_3, %c0_4, %c0_5] : memref<1x3x54x128xbf16, #tpu.memory_space<vmem>>, vector<1x1x54x128xbf16>
    %5 = vector.shape_cast %4 : vector<1x1x54x128xbf16> to vector<54x128xbf16>
    %cst_6 = arith.constant dense<0.000000e+00> : vector<96x128xf32>
    %6 = tpu.matmul %3, %5, %cst_6 {dimension_numbers = #tpu.dot_dimension_numbers<[1], [0], [0], [1], [0, 0, 1, 1], [], []>} : vector<96x54xbf16>, vector<54x128xbf16>, vector<96x128xf32> -> vector<96x128xf32>
    %7 = vector.extract_strided_slice %1 {offsets = [1, 0], sizes = [96, 54], strides = [1, 1]} : vector<98x54xbf16> to vector<96x54xbf16>
    %c0_7 = arith.constant 0 : index
    %c1 = arith.constant 1 : index
    %c0_8 = arith.constant 0 : index
    %c0_9 = arith.constant 0 : index
    %8 = vector.load %arg2[%c0_7, %c1, %c0_8, %c0_9] : memref<1x3x54x128xbf16, #tpu.memory_space<vmem>>, vector<1x1x54x128xbf16>
    %9 = vector.shape_cast %8 : vector<1x1x54x128xbf16> to vector<54x128xbf16>
    %cst_10 = arith.constant dense<0.000000e+00> : vector<96x128xf32>
    %10 = tpu.matmul %7, %9, %cst_10 {dimension_numbers = #tpu.dot_dimension_numbers<[1], [0], [0], [1], [0, 0, 1, 1], [], []>} : vector<96x54xbf16>, vector<54x128xbf16>, vector<96x128xf32> -> vector<96x128xf32>
    %11 = arith.addf %6, %10 : vector<96x128xf32>
    %12 = vector.extract_strided_slice %1 {offsets = [2, 0], sizes = [96, 54], strides = [1, 1]} : vector<98x54xbf16> to vector<96x54xbf16>
    %c0_11 = arith.constant 0 : index
    %c2 = arith.constant 2 : index
    %c0_12 = arith.constant 0 : index
    %c0_13 = arith.constant 0 : index
    %13 = vector.load %arg2[%c0_11, %c2, %c0_12, %c0_13] : memref<1x3x54x128xbf16, #tpu.memory_space<vmem>>, vector<1x1x54x128xbf16>
    %14 = vector.shape_cast %13 : vector<1x1x54x128xbf16> to vector<54x128xbf16>
    %cst_14 = arith.constant dense<0.000000e+00> : vector<96x128xf32>
    %15 = tpu.matmul %12, %14, %cst_14 {dimension_numbers = #tpu.dot_dimension_numbers<[1], [0], [0], [1], [0, 0, 1, 1], [], []>} : vector<96x54xbf16>, vector<54x128xbf16>, vector<96x128xf32> -> vector<96x128xf32>
    %16 = arith.addf %11, %15 : vector<96x128xf32>
    %c0_15 = arith.constant 0 : index
    %c0_16 = arith.constant 0 : index
    %c0_17 = arith.constant 0 : index
    %17 = vector.load %arg3[%c0_15, %c0_16, %c0_17] : memref<1x1x128xf32, #tpu.memory_space<vmem>>, vector<1x1x128xf32>
    %18 = vector.shape_cast %17 : vector<1x1x128xf32> to vector<1x128xf32>
    %19 = vector.broadcast %18 : vector<1x128xf32> to vector<96x128xf32>
    %20 = arith.addf %16, %19 : vector<96x128xf32>
    %cst_18 = arith.constant 0.000000e+00 : f32
    %21 = vector.broadcast %cst_18 : f32 to vector<96x128xf32>
    %22 = arith.maximumf %20, %21 : vector<96x128xf32>
    %23 = vector.extract_strided_slice %22 {offsets = [0, 0], sizes = [48, 128], strides = [1, 1]} : vector<96x128xf32> to vector<48x128xf32>
    %24 = vector.extract_strided_slice %22 {offsets = [48, 0], sizes = [48, 128], strides = [1, 1]} : vector<96x128xf32> to vector<48x128xf32>
    %25 = arith.subf %23, %24 : vector<48x128xf32>
    %26 = math.absf %25 : vector<48x128xf32>
    %27 = tpu.iota {dimensions = array<i32: 0>} : vector<48x1xi32>
    %c24_i32 = arith.constant 24 : i32
    %c0_i32 = arith.constant 0 : i32
    %28 = arith.cmpi eq, %c24_i32, %c0_i32 : i32
    %c1_i32 = arith.constant 1 : i32
    %29 = arith.select %28, %c1_i32, %c24_i32 : i32
    %30 = vector.broadcast %29 : i32 to vector<48x1xi32>
    %31 = arith.remsi %27, %30 : vector<48x1xi32>
    %c0_i32_19 = arith.constant 0 : i32
    %32 = vector.broadcast %c0_i32_19 : i32 to vector<48x1xi32>
    %33 = arith.cmpi ne, %31, %32 : vector<48x1xi32>
    %c0_i32_20 = arith.constant 0 : i32
    %34 = vector.broadcast %c0_i32_20 : i32 to vector<48x1xi32>
    %35 = arith.cmpi slt, %31, %34 : vector<48x1xi32>
    %c0_i32_21 = arith.constant 0 : i32
    %36 = arith.cmpi slt, %29, %c0_i32_21 : i32
    %37 = vector.broadcast %36 : i1 to vector<48x1xi1>
    %38 = vector.broadcast %37 : vector<48x1xi1> to vector<48x1xi1>
    %39 = arith.xori %35, %38 : vector<48x1xi1>
    %40 = arith.andi %39, %33 : vector<48x1xi1>
    %41 = vector.broadcast %29 : i32 to vector<48x1xi32>
    %42 = arith.addi %31, %41 : vector<48x1xi32>
    %43 = arith.select %40, %42, %31 : vector<48x1xi1>, vector<48x1xi32>
    %c16_i32 = arith.constant 16 : i32
    %44 = vector.broadcast %c16_i32 : i32 to vector<48x1xi32>
    %45 = arith.cmpi slt, %43, %44 : vector<48x1xi32>
    %cst_22 = arith.constant 0.000000e+00 : f32
    %46 = vector.shape_cast %45 : vector<48x1xi1> to vector<48x1xi1>
    %47 = vector.broadcast %46 : vector<48x1xi1> to vector<48x128xi1>
    %48 = vector.broadcast %cst_22 : f32 to vector<48x128xf32>
    %49 = arith.select %47, %26, %48 : vector<48x128xi1>, vector<48x128xf32>
    %cst_23 = arith.constant dense<0.000000e+00> : vector<48xf32>
    %50 = vector.multi_reduction <add>, %49, %cst_23 [1] : vector<48x128xf32> to vector<48xf32>
    %51 = vector.shape_cast %50 : vector<48xf32> to vector<48x1xf32>
    %cst_24 = arith.constant dense<0.000000e+00> : vector<1xf32>
    %52 = vector.multi_reduction <add>, %51, %cst_24 [0] : vector<48x1xf32> to vector<1xf32>
    %53 = vector.shape_cast %52 : vector<1xf32> to vector<1x1xf32>
    %cst_25 = arith.constant 7.62939453E-6 : f32
    %54 = vector.broadcast %cst_25 : f32 to vector<1x1xf32>
    %55 = arith.mulf %53, %54 : vector<1x1xf32>
    %56 = arith.addf %2, %55 : vector<1x1xf32>
    %57 = arith.truncf %22 : vector<96x128xf32> to vector<96x128xbf16>
    %c0_26 = arith.constant 0 : index
    %c0_27 = arith.constant 0 : index
    %58 = vector.load %arg13[%c0_26, %c0_27] : memref<128x80xbf16, #tpu.memory_space<vmem>>, vector<128x80xbf16>
    %cst_28 = arith.constant dense<0.000000e+00> : vector<96x80xf32>
    %59 = tpu.matmul %57, %58, %cst_28 {dimension_numbers = #tpu.dot_dimension_numbers<[1], [0], [0], [1], [0, 0, 1, 1], [], []>} : vector<96x128xbf16>, vector<128x80xbf16>, vector<96x80xf32> -> vector<96x80xf32>
    %c0_29 = arith.constant 0 : index
    %c0_30 = arith.constant 0 : index
    %60 = vector.load %arg12[%c0_29, %c0_30] : memref<66x96xbf16, #tpu.memory_space<vmem>>, vector<66x96xbf16>
    %61 = arith.truncf %59 : vector<96x80xf32> to vector<96x80xbf16>
    %cst_31 = arith.constant dense<0.000000e+00> : vector<66x80xf32>
    %62 = tpu.matmul %60, %61, %cst_31 {dimension_numbers = #tpu.dot_dimension_numbers<[1], [0], [0], [1], [0, 0, 1, 1], [], []>} : vector<66x96xbf16>, vector<96x80xbf16>, vector<66x80xf32> -> vector<66x80xf32>
    %63 = arith.truncf %62 : vector<66x80xf32> to vector<66x80xbf16>
    %64 = vector.extract_strided_slice %63 {offsets = [0, 0], sizes = [64, 80], strides = [1, 1]} : vector<66x80xbf16> to vector<64x80xbf16>
    %c0_32 = arith.constant 0 : index
    %c0_33 = arith.constant 0 : index
    %c0_34 = arith.constant 0 : index
    %c0_35 = arith.constant 0 : index
    %65 = vector.load %arg4[%c0_32, %c0_33, %c0_34, %c0_35] : memref<1x3x80x128xbf16, #tpu.memory_space<vmem>>, vector<1x1x80x128xbf16>
    %66 = vector.shape_cast %65 : vector<1x1x80x128xbf16> to vector<80x128xbf16>
    %cst_36 = arith.constant dense<0.000000e+00> : vector<64x128xf32>
    %67 = tpu.matmul %64, %66, %cst_36 {dimension_numbers = #tpu.dot_dimension_numbers<[1], [0], [0], [1], [0, 0, 1, 1], [], []>} : vector<64x80xbf16>, vector<80x128xbf16>, vector<64x128xf32> -> vector<64x128xf32>
    %68 = vector.extract_strided_slice %63 {offsets = [1, 0], sizes = [64, 80], strides = [1, 1]} : vector<66x80xbf16> to vector<64x80xbf16>
    %c0_37 = arith.constant 0 : index
    %c1_38 = arith.constant 1 : index
    %c0_39 = arith.constant 0 : index
    %c0_40 = arith.constant 0 : index
    %69 = vector.load %arg4[%c0_37, %c1_38, %c0_39, %c0_40] : memref<1x3x80x128xbf16, #tpu.memory_space<vmem>>, vector<1x1x80x128xbf16>
    %70 = vector.shape_cast %69 : vector<1x1x80x128xbf16> to vector<80x128xbf16>
    %cst_41 = arith.constant dense<0.000000e+00> : vector<64x128xf32>
    %71 = tpu.matmul %68, %70, %cst_41 {dimension_numbers = #tpu.dot_dimension_numbers<[1], [0], [0], [1], [0, 0, 1, 1], [], []>} : vector<64x80xbf16>, vector<80x128xbf16>, vector<64x128xf32> -> vector<64x128xf32>
    %72 = arith.addf %67, %71 : vector<64x128xf32>
    %73 = vector.extract_strided_slice %63 {offsets = [2, 0], sizes = [64, 80], strides = [1, 1]} : vector<66x80xbf16> to vector<64x80xbf16>
    %c0_42 = arith.constant 0 : index
    %c2_43 = arith.constant 2 : index
    %c0_44 = arith.constant 0 : index
    %c0_45 = arith.constant 0 : index
    %74 = vector.load %arg4[%c0_42, %c2_43, %c0_44, %c0_45] : memref<1x3x80x128xbf16, #tpu.memory_space<vmem>>, vector<1x1x80x128xbf16>
    %75 = vector.shape_cast %74 : vector<1x1x80x128xbf16> to vector<80x128xbf16>
    %cst_46 = arith.constant dense<0.000000e+00> : vector<64x128xf32>
    %76 = tpu.matmul %73, %75, %cst_46 {dimension_numbers = #tpu.dot_dimension_numbers<[1], [0], [0], [1], [0, 0, 1, 1], [], []>} : vector<64x80xbf16>, vector<80x128xbf16>, vector<64x128xf32> -> vector<64x128xf32>
    %77 = arith.addf %72, %76 : vector<64x128xf32>
    %c0_47 = arith.constant 0 : index
    %c0_48 = arith.constant 0 : index
    %c0_49 = arith.constant 0 : index
    %78 = vector.load %arg5[%c0_47, %c0_48, %c0_49] : memref<1x1x128xf32, #tpu.memory_space<vmem>>, vector<1x1x128xf32>
    %79 = vector.shape_cast %78 : vector<1x1x128xf32> to vector<1x128xf32>
    %80 = vector.broadcast %79 : vector<1x128xf32> to vector<64x128xf32>
    %81 = arith.addf %77, %80 : vector<64x128xf32>
    %cst_50 = arith.constant 0.000000e+00 : f32
    %82 = vector.broadcast %cst_50 : f32 to vector<64x128xf32>
    %83 = arith.maximumf %81, %82 : vector<64x128xf32>
    %84 = vector.extract_strided_slice %83 {offsets = [0, 0], sizes = [32, 128], strides = [1, 1]} : vector<64x128xf32> to vector<32x128xf32>
    %85 = vector.extract_strided_slice %83 {offsets = [32, 0], sizes = [32, 128], strides = [1, 1]} : vector<64x128xf32> to vector<32x128xf32>
    %86 = arith.subf %84, %85 : vector<32x128xf32>
    %87 = math.absf %86 : vector<32x128xf32>
    %88 = tpu.iota {dimensions = array<i32: 0>} : vector<32x1xi32>
    %c16_i32_51 = arith.constant 16 : i32
    %c0_i32_52 = arith.constant 0 : i32
    %89 = arith.cmpi eq, %c16_i32_51, %c0_i32_52 : i32
    %c1_i32_53 = arith.constant 1 : i32
    %90 = arith.select %89, %c1_i32_53, %c16_i32_51 : i32
    %91 = vector.broadcast %90 : i32 to vector<32x1xi32>
    %92 = arith.remsi %88, %91 : vector<32x1xi32>
    %c0_i32_54 = arith.constant 0 : i32
    %93 = vector.broadcast %c0_i32_54 : i32 to vector<32x1xi32>
    %94 = arith.cmpi ne, %92, %93 : vector<32x1xi32>
    %c0_i32_55 = arith.constant 0 : i32
    %95 = vector.broadcast %c0_i32_55 : i32 to vector<32x1xi32>
    %96 = arith.cmpi slt, %92, %95 : vector<32x1xi32>
    %c0_i32_56 = arith.constant 0 : i32
    %97 = arith.cmpi slt, %90, %c0_i32_56 : i32
    %98 = vector.broadcast %97 : i1 to vector<32x1xi1>
    %99 = vector.broadcast %98 : vector<32x1xi1> to vector<32x1xi1>
    %100 = arith.xori %96, %99 : vector<32x1xi1>
    %101 = arith.andi %100, %94 : vector<32x1xi1>
    %102 = vector.broadcast %90 : i32 to vector<32x1xi32>
    %103 = arith.addi %92, %102 : vector<32x1xi32>
    %104 = arith.select %101, %103, %92 : vector<32x1xi1>, vector<32x1xi32>
    %c8_i32 = arith.constant 8 : i32
    %105 = vector.broadcast %c8_i32 : i32 to vector<32x1xi32>
    %106 = arith.cmpi slt, %104, %105 : vector<32x1xi32>
    %cst_57 = arith.constant 0.000000e+00 : f32
    %107 = vector.shape_cast %106 : vector<32x1xi1> to vector<32x1xi1>
    %108 = vector.broadcast %107 : vector<32x1xi1> to vector<32x128xi1>
    %109 = vector.broadcast %cst_57 : f32 to vector<32x128xf32>
    %110 = arith.select %108, %87, %109 : vector<32x128xi1>, vector<32x128xf32>
    %cst_58 = arith.constant dense<0.000000e+00> : vector<32xf32>
    %111 = vector.multi_reduction <add>, %110, %cst_58 [1] : vector<32x128xf32> to vector<32xf32>
    %112 = vector.shape_cast %111 : vector<32xf32> to vector<32x1xf32>
    %cst_59 = arith.constant dense<0.000000e+00> : vector<1xf32>
    %113 = vector.multi_reduction <add>, %112, %cst_59 [0] : vector<32x1xf32> to vector<1xf32>
    %114 = vector.shape_cast %113 : vector<1xf32> to vector<1x1xf32>
    %cst_60 = arith.constant 3.05175781E-5 : f32
    %115 = vector.broadcast %cst_60 : f32 to vector<1x1xf32>
    %116 = arith.mulf %114, %115 : vector<1x1xf32>
    %117 = arith.addf %56, %116 : vector<1x1xf32>
    %118 = arith.truncf %83 : vector<64x128xf32> to vector<64x128xbf16>
    %c0_61 = arith.constant 0 : index
    %c0_62 = arith.constant 0 : index
    %119 = vector.load %arg15[%c0_61, %c0_62] : memref<128x96xbf16, #tpu.memory_space<vmem>>, vector<128x96xbf16>
    %cst_63 = arith.constant dense<0.000000e+00> : vector<64x96xf32>
    %120 = tpu.matmul %118, %119, %cst_63 {dimension_numbers = #tpu.dot_dimension_numbers<[1], [0], [0], [1], [0, 0, 1, 1], [], []>} : vector<64x128xbf16>, vector<128x96xbf16>, vector<64x96xf32> -> vector<64x96xf32>
    %c0_64 = arith.constant 0 : index
    %c0_65 = arith.constant 0 : index
    %121 = vector.load %arg14[%c0_64, %c0_65] : memref<34x64xbf16, #tpu.memory_space<vmem>>, vector<34x64xbf16>
    %122 = arith.truncf %120 : vector<64x96xf32> to vector<64x96xbf16>
    %cst_66 = arith.constant dense<0.000000e+00> : vector<34x96xf32>
    %123 = tpu.matmul %121, %122, %cst_66 {dimension_numbers = #tpu.dot_dimension_numbers<[1], [0], [0], [1], [0, 0, 1, 1], [], []>} : vector<34x64xbf16>, vector<64x96xbf16>, vector<34x96xf32> -> vector<34x96xf32>
    %124 = arith.truncf %123 : vector<34x96xf32> to vector<34x96xbf16>
    %125 = vector.extract_strided_slice %124 {offsets = [0, 0], sizes = [32, 96], strides = [1, 1]} : vector<34x96xbf16> to vector<32x96xbf16>
    %c0_67 = arith.constant 0 : index
    %c0_68 = arith.constant 0 : index
    %c0_69 = arith.constant 0 : index
    %c0_70 = arith.constant 0 : index
    %126 = vector.load %arg6[%c0_67, %c0_68, %c0_69, %c0_70] : memref<1x3x96x64xbf16, #tpu.memory_space<vmem>>, vector<1x1x96x64xbf16>
    %127 = vector.shape_cast %126 : vector<1x1x96x64xbf16> to vector<96x64xbf16>
    %cst_71 = arith.constant dense<0.000000e+00> : vector<32x64xf32>
    %128 = tpu.matmul %125, %127, %cst_71 {dimension_numbers = #tpu.dot_dimension_numbers<[1], [0], [0], [1], [0, 0, 1, 1], [], []>} : vector<32x96xbf16>, vector<96x64xbf16>, vector<32x64xf32> -> vector<32x64xf32>
    %129 = vector.extract_strided_slice %124 {offsets = [1, 0], sizes = [32, 96], strides = [1, 1]} : vector<34x96xbf16> to vector<32x96xbf16>
    %c0_72 = arith.constant 0 : index
    %c1_73 = arith.constant 1 : index
    %c0_74 = arith.constant 0 : index
    %c0_75 = arith.constant 0 : index
    %130 = vector.load %arg6[%c0_72, %c1_73, %c0_74, %c0_75] : memref<1x3x96x64xbf16, #tpu.memory_space<vmem>>, vector<1x1x96x64xbf16>
    %131 = vector.shape_cast %130 : vector<1x1x96x64xbf16> to vector<96x64xbf16>
    %cst_76 = arith.constant dense<0.000000e+00> : vector<32x64xf32>
    %132 = tpu.matmul %129, %131, %cst_76 {dimension_numbers = #tpu.dot_dimension_numbers<[1], [0], [0], [1], [0, 0, 1, 1], [], []>} : vector<32x96xbf16>, vector<96x64xbf16>, vector<32x64xf32> -> vector<32x64xf32>
    %133 = arith.addf %128, %132 : vector<32x64xf32>
    %134 = vector.extract_strided_slice %124 {offsets = [2, 0], sizes = [32, 96], strides = [1, 1]} : vector<34x96xbf16> to vector<32x96xbf16>
    %c0_77 = arith.constant 0 : index
    %c2_78 = arith.constant 2 : index
    %c0_79 = arith.constant 0 : index
    %c0_80 = arith.constant 0 : index
    %135 = vector.load %arg6[%c0_77, %c2_78, %c0_79, %c0_80] : memref<1x3x96x64xbf16, #tpu.memory_space<vmem>>, vector<1x1x96x64xbf16>
    %136 = vector.shape_cast %135 : vector<1x1x96x64xbf16> to vector<96x64xbf16>
    %cst_81 = arith.constant dense<0.000000e+00> : vector<32x64xf32>
    %137 = tpu.matmul %134, %136, %cst_81 {dimension_numbers = #tpu.dot_dimension_numbers<[1], [0], [0], [1], [0, 0, 1, 1], [], []>} : vector<32x96xbf16>, vector<96x64xbf16>, vector<32x64xf32> -> vector<32x64xf32>
    %138 = arith.addf %133, %137 : vector<32x64xf32>
    %c0_82 = arith.constant 0 : index
    %c0_83 = arith.constant 0 : index
    %c0_84 = arith.constant 0 : index
    %139 = vector.load %arg7[%c0_82, %c0_83, %c0_84] : memref<1x1x64xf32, #tpu.memory_space<vmem>>, vector<1x1x64xf32>
    %140 = vector.shape_cast %139 : vector<1x1x64xf32> to vector<1x64xf32>
    %141 = vector.broadcast %140 : vector<1x64xf32> to vector<32x64xf32>
    %142 = arith.addf %138, %141 : vector<32x64xf32>
    %cst_85 = arith.constant 0.000000e+00 : f32
    %143 = vector.broadcast %cst_85 : f32 to vector<32x64xf32>
    %144 = arith.maximumf %142, %143 : vector<32x64xf32>
    %145 = vector.extract_strided_slice %144 {offsets = [0, 0], sizes = [16, 64], strides = [1, 1]} : vector<32x64xf32> to vector<16x64xf32>
    %146 = vector.extract_strided_slice %144 {offsets = [16, 0], sizes = [16, 64], strides = [1, 1]} : vector<32x64xf32> to vector<16x64xf32>
    %147 = arith.subf %145, %146 : vector<16x64xf32>
    %148 = math.absf %147 : vector<16x64xf32>
    %149 = tpu.iota {dimensions = array<i32: 0>} : vector<16x1xi32>
    %c8_i32_86 = arith.constant 8 : i32
    %c0_i32_87 = arith.constant 0 : i32
    %150 = arith.cmpi eq, %c8_i32_86, %c0_i32_87 : i32
    %c1_i32_88 = arith.constant 1 : i32
    %151 = arith.select %150, %c1_i32_88, %c8_i32_86 : i32
    %152 = vector.broadcast %151 : i32 to vector<16x1xi32>
    %153 = arith.remsi %149, %152 : vector<16x1xi32>
    %c0_i32_89 = arith.constant 0 : i32
    %154 = vector.broadcast %c0_i32_89 : i32 to vector<16x1xi32>
    %155 = arith.cmpi ne, %153, %154 : vector<16x1xi32>
    %c0_i32_90 = arith.constant 0 : i32
    %156 = vector.broadcast %c0_i32_90 : i32 to vector<16x1xi32>
    %157 = arith.cmpi slt, %153, %156 : vector<16x1xi32>
    %c0_i32_91 = arith.constant 0 : i32
    %158 = arith.cmpi slt, %151, %c0_i32_91 : i32
    %159 = vector.broadcast %158 : i1 to vector<16x1xi1>
    %160 = vector.broadcast %159 : vector<16x1xi1> to vector<16x1xi1>
    %161 = arith.xori %157, %160 : vector<16x1xi1>
    %162 = arith.andi %161, %155 : vector<16x1xi1>
    %163 = vector.broadcast %151 : i32 to vector<16x1xi32>
    %164 = arith.addi %153, %163 : vector<16x1xi32>
    %165 = arith.select %162, %164, %153 : vector<16x1xi1>, vector<16x1xi32>
    %c4_i32 = arith.constant 4 : i32
    %166 = vector.broadcast %c4_i32 : i32 to vector<16x1xi32>
    %167 = arith.cmpi slt, %165, %166 : vector<16x1xi32>
    %cst_92 = arith.constant 0.000000e+00 : f32
    %168 = vector.shape_cast %167 : vector<16x1xi1> to vector<16x1xi1>
    %169 = vector.broadcast %168 : vector<16x1xi1> to vector<16x64xi1>
    %170 = vector.broadcast %cst_92 : f32 to vector<16x64xf32>
    %171 = arith.select %169, %148, %170 : vector<16x64xi1>, vector<16x64xf32>
    %cst_93 = arith.constant dense<0.000000e+00> : vector<16xf32>
    %172 = vector.multi_reduction <add>, %171, %cst_93 [1] : vector<16x64xf32> to vector<16xf32>
    %173 = vector.shape_cast %172 : vector<16xf32> to vector<16x1xf32>
    %cst_94 = arith.constant dense<0.000000e+00> : vector<1xf32>
    %174 = vector.multi_reduction <add>, %173, %cst_94 [0] : vector<16x1xf32> to vector<1xf32>
    %175 = vector.shape_cast %174 : vector<1xf32> to vector<1x1xf32>
    %cst_95 = arith.constant 2.44140625E-4 : f32
    %176 = vector.broadcast %cst_95 : f32 to vector<1x1xf32>
    %177 = arith.mulf %175, %176 : vector<1x1xf32>
    %178 = arith.addf %117, %177 : vector<1x1xf32>
    %179 = arith.truncf %144 : vector<32x64xf32> to vector<32x64xbf16>
    %c0_96 = arith.constant 0 : index
    %c0_97 = arith.constant 0 : index
    %180 = vector.load %arg17[%c0_96, %c0_97] : memref<64x64xbf16, #tpu.memory_space<vmem>>, vector<64x64xbf16>
    %cst_98 = arith.constant dense<0.000000e+00> : vector<32x64xf32>
    %181 = tpu.matmul %179, %180, %cst_98 {dimension_numbers = #tpu.dot_dimension_numbers<[1], [0], [0], [1], [0, 0, 1, 1], [], []>} : vector<32x64xbf16>, vector<64x64xbf16>, vector<32x64xf32> -> vector<32x64xf32>
    %c0_99 = arith.constant 0 : index
    %c0_100 = arith.constant 0 : index
    %182 = vector.load %arg16[%c0_99, %c0_100] : memref<34x32xbf16, #tpu.memory_space<vmem>>, vector<34x32xbf16>
    %183 = arith.truncf %181 : vector<32x64xf32> to vector<32x64xbf16>
    %cst_101 = arith.constant dense<0.000000e+00> : vector<34x64xf32>
    %184 = tpu.matmul %182, %183, %cst_101 {dimension_numbers = #tpu.dot_dimension_numbers<[1], [0], [0], [1], [0, 0, 1, 1], [], []>} : vector<34x32xbf16>, vector<32x64xbf16>, vector<34x64xf32> -> vector<34x64xf32>
    %185 = arith.truncf %184 : vector<34x64xf32> to vector<34x64xbf16>
    %186 = vector.extract_strided_slice %185 {offsets = [0, 0], sizes = [32, 64], strides = [1, 1]} : vector<34x64xbf16> to vector<32x64xbf16>
    %c0_102 = arith.constant 0 : index
    %c0_103 = arith.constant 0 : index
    %c0_104 = arith.constant 0 : index
    %c0_105 = arith.constant 0 : index
    %187 = vector.load %arg8[%c0_102, %c0_103, %c0_104, %c0_105] : memref<1x3x64x32xbf16, #tpu.memory_space<vmem>>, vector<1x1x64x32xbf16>
    %188 = vector.shape_cast %187 : vector<1x1x64x32xbf16> to vector<64x32xbf16>
    %cst_106 = arith.constant dense<0.000000e+00> : vector<32x32xf32>
    %189 = tpu.matmul %186, %188, %cst_106 {dimension_numbers = #tpu.dot_dimension_numbers<[1], [0], [0], [1], [0, 0, 1, 1], [], []>} : vector<32x64xbf16>, vector<64x32xbf16>, vector<32x32xf32> -> vector<32x32xf32>
    %190 = vector.extract_strided_slice %185 {offsets = [1, 0], sizes = [32, 64], strides = [1, 1]} : vector<34x64xbf16> to vector<32x64xbf16>
    %c0_107 = arith.constant 0 : index
    %c1_108 = arith.constant 1 : index
    %c0_109 = arith.constant 0 : index
    %c0_110 = arith.constant 0 : index
    %191 = vector.load %arg8[%c0_107, %c1_108, %c0_109, %c0_110] : memref<1x3x64x32xbf16, #tpu.memory_space<vmem>>, vector<1x1x64x32xbf16>
    %192 = vector.shape_cast %191 : vector<1x1x64x32xbf16> to vector<64x32xbf16>
    %cst_111 = arith.constant dense<0.000000e+00> : vector<32x32xf32>
    %193 = tpu.matmul %190, %192, %cst_111 {dimension_numbers = #tpu.dot_dimension_numbers<[1], [0], [0], [1], [0, 0, 1, 1], [], []>} : vector<32x64xbf16>, vector<64x32xbf16>, vector<32x32xf32> -> vector<32x32xf32>
    %194 = arith.addf %189, %193 : vector<32x32xf32>
    %195 = vector.extract_strided_slice %185 {offsets = [2, 0], sizes = [32, 64], strides = [1, 1]} : vector<34x64xbf16> to vector<32x64xbf16>
    %c0_112 = arith.constant 0 : index
    %c2_113 = arith.constant 2 : index
    %c0_114 = arith.constant 0 : index
    %c0_115 = arith.constant 0 : index
    %196 = vector.load %arg8[%c0_112, %c2_113, %c0_114, %c0_115] : memref<1x3x64x32xbf16, #tpu.memory_space<vmem>>, vector<1x1x64x32xbf16>
    %197 = vector.shape_cast %196 : vector<1x1x64x32xbf16> to vector<64x32xbf16>
    %cst_116 = arith.constant dense<0.000000e+00> : vector<32x32xf32>
    %198 = tpu.matmul %195, %197, %cst_116 {dimension_numbers = #tpu.dot_dimension_numbers<[1], [0], [0], [1], [0, 0, 1, 1], [], []>} : vector<32x64xbf16>, vector<64x32xbf16>, vector<32x32xf32> -> vector<32x32xf32>
    %199 = arith.addf %194, %198 : vector<32x32xf32>
    %c0_117 = arith.constant 0 : index
    %c0_118 = arith.constant 0 : index
    %c0_119 = arith.constant 0 : index
    %200 = vector.load %arg9[%c0_117, %c0_118, %c0_119] : memref<1x1x32xf32, #tpu.memory_space<vmem>>, vector<1x1x32xf32>
    %201 = vector.shape_cast %200 : vector<1x1x32xf32> to vector<1x32xf32>
    %202 = vector.broadcast %201 : vector<1x32xf32> to vector<32x32xf32>
    %203 = arith.addf %199, %202 : vector<32x32xf32>
    %cst_120 = arith.constant 0.000000e+00 : f32
    %204 = vector.broadcast %cst_120 : f32 to vector<32x32xf32>
    %205 = arith.maximumf %203, %204 : vector<32x32xf32>
    %206 = vector.extract_strided_slice %205 {offsets = [0, 0], sizes = [16, 32], strides = [1, 1]} : vector<32x32xf32> to vector<16x32xf32>
    %207 = vector.extract_strided_slice %205 {offsets = [16, 0], sizes = [16, 32], strides = [1, 1]} : vector<32x32xf32> to vector<16x32xf32>
    %208 = arith.subf %206, %207 : vector<16x32xf32>
    %209 = math.absf %208 : vector<16x32xf32>
    %210 = tpu.iota {dimensions = array<i32: 0>} : vector<16x1xi32>
    %c8_i32_121 = arith.constant 8 : i32
    %c0_i32_122 = arith.constant 0 : i32
    %211 = arith.cmpi eq, %c8_i32_121, %c0_i32_122 : i32
    %c1_i32_123 = arith.constant 1 : i32
    %212 = arith.select %211, %c1_i32_123, %c8_i32_121 : i32
    %213 = vector.broadcast %212 : i32 to vector<16x1xi32>
    %214 = arith.remsi %210, %213 : vector<16x1xi32>
    %c0_i32_124 = arith.constant 0 : i32
    %215 = vector.broadcast %c0_i32_124 : i32 to vector<16x1xi32>
    %216 = arith.cmpi ne, %214, %215 : vector<16x1xi32>
    %c0_i32_125 = arith.constant 0 : i32
    %217 = vector.broadcast %c0_i32_125 : i32 to vector<16x1xi32>
    %218 = arith.cmpi slt, %214, %217 : vector<16x1xi32>
    %c0_i32_126 = arith.constant 0 : i32
    %219 = arith.cmpi slt, %212, %c0_i32_126 : i32
    %220 = vector.broadcast %219 : i1 to vector<16x1xi1>
    %221 = vector.broadcast %220 : vector<16x1xi1> to vector<16x1xi1>
    %222 = arith.xori %218, %221 : vector<16x1xi1>
    %223 = arith.andi %222, %216 : vector<16x1xi1>
    %224 = vector.broadcast %212 : i32 to vector<16x1xi32>
    %225 = arith.addi %214, %224 : vector<16x1xi32>
    %226 = arith.select %223, %225, %214 : vector<16x1xi1>, vector<16x1xi32>
    %c2_i32 = arith.constant 2 : i32
    %227 = vector.broadcast %c2_i32 : i32 to vector<16x1xi32>
    %228 = arith.cmpi slt, %226, %227 : vector<16x1xi32>
    %cst_127 = arith.constant 0.000000e+00 : f32
    %229 = vector.shape_cast %228 : vector<16x1xi1> to vector<16x1xi1>
    %230 = vector.broadcast %229 : vector<16x1xi1> to vector<16x32xi1>
    %231 = vector.broadcast %cst_127 : f32 to vector<16x32xf32>
    %232 = arith.select %230, %209, %231 : vector<16x32xi1>, vector<16x32xf32>
    %cst_128 = arith.constant dense<0.000000e+00> : vector<16xf32>
    %233 = vector.multi_reduction <add>, %232, %cst_128 [1] : vector<16x32xf32> to vector<16xf32>
    %234 = vector.shape_cast %233 : vector<16xf32> to vector<16x1xf32>
    %cst_129 = arith.constant dense<0.000000e+00> : vector<1xf32>
    %235 = vector.multi_reduction <add>, %234, %cst_129 [0] : vector<16x1xf32> to vector<1xf32>
    %236 = vector.shape_cast %235 : vector<1xf32> to vector<1x1xf32>
    %cst_130 = arith.constant 0.001953125 : f32
    %237 = vector.broadcast %cst_130 : f32 to vector<1x1xf32>
    %238 = arith.mulf %236, %237 : vector<1x1xf32>
    %239 = arith.addf %178, %238 : vector<1x1xf32>
    %240 = arith.truncf %205 : vector<32x32xf32> to vector<32x32xbf16>
    %c0_131 = arith.constant 0 : index
    %c0_132 = arith.constant 0 : index
    %241 = vector.load %arg19[%c0_131, %c0_132] : memref<32x48xbf16, #tpu.memory_space<vmem>>, vector<32x48xbf16>
    %cst_133 = arith.constant dense<0.000000e+00> : vector<32x48xf32>
    %242 = tpu.matmul %240, %241, %cst_133 {dimension_numbers = #tpu.dot_dimension_numbers<[1], [0], [0], [1], [0, 0, 1, 1], [], []>} : vector<32x32xbf16>, vector<32x48xbf16>, vector<32x48xf32> -> vector<32x48xf32>
    %c0_134 = arith.constant 0 : index
    %c0_135 = arith.constant 0 : index
    %243 = vector.load %arg18[%c0_134, %c0_135] : memref<34x32xbf16, #tpu.memory_space<vmem>>, vector<34x32xbf16>
    %244 = arith.truncf %242 : vector<32x48xf32> to vector<32x48xbf16>
    %cst_136 = arith.constant dense<0.000000e+00> : vector<34x48xf32>
    %245 = tpu.matmul %243, %244, %cst_136 {dimension_numbers = #tpu.dot_dimension_numbers<[1], [0], [0], [1], [0, 0, 1, 1], [], []>} : vector<34x32xbf16>, vector<32x48xbf16>, vector<34x48xf32> -> vector<34x48xf32>
    %246 = arith.truncf %245 : vector<34x48xf32> to vector<34x48xbf16>
    %247 = vector.extract_strided_slice %246 {offsets = [0, 0], sizes = [32, 48], strides = [1, 1]} : vector<34x48xbf16> to vector<32x48xbf16>
    %c0_137 = arith.constant 0 : index
    %c0_138 = arith.constant 0 : index
    %c0_139 = arith.constant 0 : index
    %c0_140 = arith.constant 0 : index
    %248 = vector.load %arg10[%c0_137, %c0_138, %c0_139, %c0_140] : memref<1x3x48x16xbf16, #tpu.memory_space<vmem>>, vector<1x1x48x16xbf16>
    %249 = vector.shape_cast %248 : vector<1x1x48x16xbf16> to vector<48x16xbf16>
    %cst_141 = arith.constant dense<0.000000e+00> : vector<32x16xf32>
    %250 = tpu.matmul %247, %249, %cst_141 {dimension_numbers = #tpu.dot_dimension_numbers<[1], [0], [0], [1], [0, 0, 1, 1], [], []>} : vector<32x48xbf16>, vector<48x16xbf16>, vector<32x16xf32> -> vector<32x16xf32>
    %251 = vector.extract_strided_slice %246 {offsets = [1, 0], sizes = [32, 48], strides = [1, 1]} : vector<34x48xbf16> to vector<32x48xbf16>
    %c0_142 = arith.constant 0 : index
    %c1_143 = arith.constant 1 : index
    %c0_144 = arith.constant 0 : index
    %c0_145 = arith.constant 0 : index
    %252 = vector.load %arg10[%c0_142, %c1_143, %c0_144, %c0_145] : memref<1x3x48x16xbf16, #tpu.memory_space<vmem>>, vector<1x1x48x16xbf16>
    %253 = vector.shape_cast %252 : vector<1x1x48x16xbf16> to vector<48x16xbf16>
    %cst_146 = arith.constant dense<0.000000e+00> : vector<32x16xf32>
    %254 = tpu.matmul %251, %253, %cst_146 {dimension_numbers = #tpu.dot_dimension_numbers<[1], [0], [0], [1], [0, 0, 1, 1], [], []>} : vector<32x48xbf16>, vector<48x16xbf16>, vector<32x16xf32> -> vector<32x16xf32>
    %255 = arith.addf %250, %254 : vector<32x16xf32>
    %256 = vector.extract_strided_slice %246 {offsets = [2, 0], sizes = [32, 48], strides = [1, 1]} : vector<34x48xbf16> to vector<32x48xbf16>
    %c0_147 = arith.constant 0 : index
    %c2_148 = arith.constant 2 : index
    %c0_149 = arith.constant 0 : index
    %c0_150 = arith.constant 0 : index
    %257 = vector.load %arg10[%c0_147, %c2_148, %c0_149, %c0_150] : memref<1x3x48x16xbf16, #tpu.memory_space<vmem>>, vector<1x1x48x16xbf16>
    %258 = vector.shape_cast %257 : vector<1x1x48x16xbf16> to vector<48x16xbf16>
    %cst_151 = arith.constant dense<0.000000e+00> : vector<32x16xf32>
    %259 = tpu.matmul %256, %258, %cst_151 {dimension_numbers = #tpu.dot_dimension_numbers<[1], [0], [0], [1], [0, 0, 1, 1], [], []>} : vector<32x48xbf16>, vector<48x16xbf16>, vector<32x16xf32> -> vector<32x16xf32>
    %260 = arith.addf %255, %259 : vector<32x16xf32>
    %c0_152 = arith.constant 0 : index
    %c0_153 = arith.constant 0 : index
    %c0_154 = arith.constant 0 : index
    %261 = vector.load %arg11[%c0_152, %c0_153, %c0_154] : memref<1x1x16xf32, #tpu.memory_space<vmem>>, vector<1x1x16xf32>
    %262 = vector.shape_cast %261 : vector<1x1x16xf32> to vector<1x16xf32>
    %263 = vector.broadcast %262 : vector<1x16xf32> to vector<32x16xf32>
    %264 = arith.addf %260, %263 : vector<32x16xf32>
    %cst_155 = arith.constant 0.000000e+00 : f32
    %265 = vector.broadcast %cst_155 : f32 to vector<32x16xf32>
    %266 = arith.maximumf %264, %265 : vector<32x16xf32>
    %267 = vector.extract_strided_slice %266 {offsets = [0, 0], sizes = [16, 16], strides = [1, 1]} : vector<32x16xf32> to vector<16x16xf32>
    %268 = vector.extract_strided_slice %266 {offsets = [16, 0], sizes = [16, 16], strides = [1, 1]} : vector<32x16xf32> to vector<16x16xf32>
    %269 = arith.subf %267, %268 : vector<16x16xf32>
    %270 = math.absf %269 : vector<16x16xf32>
    %271 = tpu.iota {dimensions = array<i32: 0>} : vector<16x1xi32>
    %c8_i32_156 = arith.constant 8 : i32
    %c0_i32_157 = arith.constant 0 : i32
    %272 = arith.cmpi eq, %c8_i32_156, %c0_i32_157 : i32
    %c1_i32_158 = arith.constant 1 : i32
    %273 = arith.select %272, %c1_i32_158, %c8_i32_156 : i32
    %274 = vector.broadcast %273 : i32 to vector<16x1xi32>
    %275 = arith.remsi %271, %274 : vector<16x1xi32>
    %c0_i32_159 = arith.constant 0 : i32
    %276 = vector.broadcast %c0_i32_159 : i32 to vector<16x1xi32>
    %277 = arith.cmpi ne, %275, %276 : vector<16x1xi32>
    %c0_i32_160 = arith.constant 0 : i32
    %278 = vector.broadcast %c0_i32_160 : i32 to vector<16x1xi32>
    %279 = arith.cmpi slt, %275, %278 : vector<16x1xi32>
    %c0_i32_161 = arith.constant 0 : i32
    %280 = arith.cmpi slt, %273, %c0_i32_161 : i32
    %281 = vector.broadcast %280 : i1 to vector<16x1xi1>
    %282 = vector.broadcast %281 : vector<16x1xi1> to vector<16x1xi1>
    %283 = arith.xori %279, %282 : vector<16x1xi1>
    %284 = arith.andi %283, %277 : vector<16x1xi1>
    %285 = vector.broadcast %273 : i32 to vector<16x1xi32>
    %286 = arith.addi %275, %285 : vector<16x1xi32>
    %287 = arith.select %284, %286, %275 : vector<16x1xi1>, vector<16x1xi32>
    %c1_i32_162 = arith.constant 1 : i32
    %288 = vector.broadcast %c1_i32_162 : i32 to vector<16x1xi32>
    %289 = arith.cmpi slt, %287, %288 : vector<16x1xi32>
    %cst_163 = arith.constant 0.000000e+00 : f32
    %290 = vector.shape_cast %289 : vector<16x1xi1> to vector<16x1xi1>
    %291 = vector.broadcast %290 : vector<16x1xi1> to vector<16x16xi1>
    %292 = vector.broadcast %cst_163 : f32 to vector<16x16xf32>
    %293 = arith.select %291, %270, %292 : vector<16x16xi1>, vector<16x16xf32>
    %cst_164 = arith.constant dense<0.000000e+00> : vector<16xf32>
    %294 = vector.multi_reduction <add>, %293, %cst_164 [1] : vector<16x16xf32> to vector<16xf32>
    %295 = vector.shape_cast %294 : vector<16xf32> to vector<16x1xf32>
    %cst_165 = arith.constant dense<0.000000e+00> : vector<1xf32>
    %296 = vector.multi_reduction <add>, %295, %cst_165 [0] : vector<16x1xf32> to vector<1xf32>
    %297 = vector.shape_cast %296 : vector<1xf32> to vector<1x1xf32>
    %cst_166 = arith.constant 3.125000e-02 : f32
    %298 = vector.broadcast %cst_166 : f32 to vector<1x1xf32>
    %299 = arith.mulf %297, %298 : vector<1x1xf32>
    %300 = arith.addf %239, %299 : vector<1x1xf32>
    %c0_167 = arith.constant 0 : index
    %c0_168 = arith.constant 0 : index
    %c0_169 = arith.constant 0 : index
    %301 = vector.load %arg20[%c0_167, %c0_168, %c0_169] : memref<1x1x1xf32, #tpu.memory_space<vmem>>, vector<1x1x1xf32>
    %302 = vector.shape_cast %301 : vector<1x1x1xf32> to vector<1x1xf32>
    %303 = vector.shape_cast %300 : vector<1x1xf32> to vector<1x1x1xf32>
    tpu.vector_store %arg20[%c0_167, %c0_168, %c0_169], %303 {strides = array<i32>} : memref<1x1x1xf32, #tpu.memory_space<vmem>>, vector<1x1x1xf32>,
    return
  }
  func.func @transform_0(%arg0: i32) -> (i32, i32, i32) {
    %c0_i32 = arith.constant 0 : i32
    %c0_i32_0 = arith.constant 0 : i32
    %c0_i32_1 = arith.constant 0 : i32
    return %arg0, %c0_i32, %c0_i32_0 : i32, i32, i32
  }
  func.func @transform_1(%arg0: i32) -> (i32, i32, i32, i32) {
    %c0_i32 = arith.constant 0 : i32
    %c0_i32_0 = arith.constant 0 : i32
    %c0_i32_1 = arith.constant 0 : i32
    %c0_i32_2 = arith.constant 0 : i32
    return %arg0, %c0_i32, %c0_i32_0, %c0_i32_1 : i32, i32, i32, i32
  }
  func.func @transform_2(%arg0: i32) -> (i32, i32, i32) {
    %c0_i32 = arith.constant 0 : i32
    %c0_i32_0 = arith.constant 0 : i32
    %c0_i32_1 = arith.constant 0 : i32
    return %arg0, %c0_i32, %c0_i32_0 : i32, i32, i32
  }
  func.func @transform_3(%arg0: i32) -> (i32, i32, i32, i32) {
    %c0_i32 = arith.constant 0 : i32
    %c0_i32_0 = arith.constant 0 : i32
    %c0_i32_1 = arith.constant 0 : i32
    %c0_i32_2 = arith.constant 0 : i32
    return %arg0, %c0_i32, %c0_i32_0, %c0_i32_1 : i32, i32, i32, i32
  }
  func.func @transform_4(%arg0: i32) -> (i32, i32, i32) {
    %c0_i32 = arith.constant 0 : i32
    %c0_i32_0 = arith.constant 0 : i32
    %c0_i32_1 = arith.constant 0 : i32
    return %arg0, %c0_i32, %c0_i32_0 : i32, i32, i32
  }
  func.func @transform_5(%arg0: i32) -> (i32, i32, i32, i32) {
    %c0_i32 = arith.constant 0 : i32
    %c0_i32_0 = arith.constant 0 : i32
    %c0_i32_1 = arith.constant 0 : i32
    %c0_i32_2 = arith.constant 0 : i32
    return %arg0, %c0_i32, %c0_i32_0, %c0_i32_1 : i32, i32, i32, i32
  }
  func.func @transform_6(%arg0: i32) -> (i32, i32, i32) {
    %c0_i32 = arith.constant 0 : i32
    %c0_i32_0 = arith.constant 0 : i32
    %c0_i32_1 = arith.constant 0 : i32
    return %arg0, %c0_i32, %c0_i32_0 : i32, i32, i32
  }
  func.func @transform_7(%arg0: i32) -> (i32, i32, i32, i32) {
    %c0_i32 = arith.constant 0 : i32
    %c0_i32_0 = arith.constant 0 : i32
    %c0_i32_1 = arith.constant 0 : i32
    %c0_i32_2 = arith.constant 0 : i32
    return %arg0, %c0_i32, %c0_i32_0, %c0_i32_1 : i32, i32, i32, i32
  }
  func.func @transform_8(%arg0: i32) -> (i32, i32, i32) {
    %c0_i32 = arith.constant 0 : i32
    %c0_i32_0 = arith.constant 0 : i32
    %c0_i32_1 = arith.constant 0 : i32
    return %arg0, %c0_i32, %c0_i32_0 : i32, i32, i32
  }
  func.func @transform_9(%arg0: i32) -> (i32, i32, i32, i32) {
    %c0_i32 = arith.constant 0 : i32
    %c0_i32_0 = arith.constant 0 : i32
    %c0_i32_1 = arith.constant 0 : i32
    %c0_i32_2 = arith.constant 0 : i32
    return %arg0, %c0_i32, %c0_i32_0, %c0_i32_1 : i32, i32, i32, i32
  }
  func.func @transform_10(%arg0: i32) -> (i32, i32, i32) {
    %c0_i32 = arith.constant 0 : i32
    %c0_i32_0 = arith.constant 0 : i32
    %c0_i32_1 = arith.constant 0 : i32
    return %arg0, %c0_i32, %c0_i32_0 : i32, i32, i32
  }
  func.func @transform_11(%arg0: i32) -> (i32, i32) {
    %c0_i32 = arith.constant 0 : i32
    %c0_i32_0 = arith.constant 0 : i32
    %c0_i32_1 = arith.constant 0 : i32
    return %c0_i32, %c0_i32_0 : i32, i32
  }
  func.func @transform_12(%arg0: i32) -> (i32, i32) {
    %c0_i32 = arith.constant 0 : i32
    %c0_i32_0 = arith.constant 0 : i32
    %c0_i32_1 = arith.constant 0 : i32
    return %c0_i32, %c0_i32_0 : i32, i32
  }
  func.func @transform_13(%arg0: i32) -> (i32, i32) {
    %c0_i32 = arith.constant 0 : i32
    %c0_i32_0 = arith.constant 0 : i32
    %c0_i32_1 = arith.constant 0 : i32
    return %c0_i32, %c0_i32_0 : i32, i32
  }
  func.func @transform_14(%arg0: i32) -> (i32, i32) {
    %c0_i32 = arith.constant 0 : i32
    %c0_i32_0 = arith.constant 0 : i32
    %c0_i32_1 = arith.constant 0 : i32
    return %c0_i32, %c0_i32_0 : i32, i32
  }
  func.func @transform_15(%arg0: i32) -> (i32, i32) {
    %c0_i32 = arith.constant 0 : i32
    %c0_i32_0 = arith.constant 0 : i32
    %c0_i32_1 = arith.constant 0 : i32
    return %c0_i32, %c0_i32_0 : i32, i32
  }
  func.func @transform_16(%arg0: i32) -> (i32, i32) {
    %c0_i32 = arith.constant 0 : i32
    %c0_i32_0 = arith.constant 0 : i32
    %c0_i32_1 = arith.constant 0 : i32
    return %c0_i32, %c0_i32_0 : i32, i32
  }
  func.func @transform_17(%arg0: i32) -> (i32, i32) {
    %c0_i32 = arith.constant 0 : i32
    %c0_i32_0 = arith.constant 0 : i32
    %c0_i32_1 = arith.constant 0 : i32
    return %c0_i32, %c0_i32_0 : i32, i32
  }
  func.func @transform_18(%arg0: i32) -> (i32, i32) {
    %c0_i32 = arith.constant 0 : i32
    %c0_i32_0 = arith.constant 0 : i32
    %c0_i32_1 = arith.constant 0 : i32
    return %c0_i32, %c0_i32_0 : i32, i32
  }
  func.func @transform_19(%arg0: i32) -> (i32, i32, i32) {
    %c0_i32 = arith.constant 0 : i32
    %c0_i32_0 = arith.constant 0 : i32
    %c0_i32_1 = arith.constant 0 : i32
    return %arg0, %c0_i32, %c0_i32_0 : i32, i32, i32
  }
}

</mosaic_0001>

<bundles_post_ra>
// kernel: _perceptual_losses.1
= control target key start
LH: loop header
LB: loop body
LE: loop exit
PB: predicated region body
PF: predicated region fallthrough
CT: control target
= control target key end

     0   :  { %s4728_s0 = inlined_call_operand.vmem [shape: bf16[2,98,54], index: 0, kind: input, shape index: {}]   ;;  %s4729_s1 = inlined_call_operand.vmem [shape: bf16[2,3,54,128], index: 1, kind: input, shape index: {}]   ;;  %s4730_s2 = inlined_call_operand.vmem [shape: f32[2,1,128], index: 2, kind: input, shape index: {}]   ;;  %s4731_s3 = inlined_call_operand.vmem [shape: bf16[2,3,80,128], index: 3, kind: input, shape index: {}]   ;;  %s4732_s4 = inlined_call_operand.vmem [shape: f32[2,1,128], index: 4, kind: input, shape index: {}]   ;;  %s4733_s5 = inlined_call_operand.vmem [shape: bf16[2,3,96,64], index: 5, kind: input, shape index: {}]   ;;  %s4734_s6 = inlined_call_operand.vmem [shape: f32[2,1,64], index: 6, kind: input, shape index: {}]   ;;  %s4735_s7 = inlined_call_operand.vmem [shape: bf16[2,3,64,32], index: 7, kind: input, shape index: {}]   ;;  %s4736_s8 = inlined_call_operand.vmem [shape: f32[2,1,32], index: 8, kind: input, shape index: {}]   ;;  %s4737_s9 = inlined_call_operand.vmem [shape: bf16[2,3,48,16], index: 9, kind: input, shape index: {}]   ;;  %s4738_s10 = inlined_call_operand.vmem [shape: f32[2,1,16], index: 10, kind: input, shape index: {}]   ;;  %s4739_s11 = inlined_call_operand.vmem [shape: bf16[66,96], index: 11, kind: input, shape index: {}]   ;;  %s4740_s12 = inlined_call_operand.vmem [shape: bf16[128,80], index: 12, kind: input, shape index: {}]   ;;  %s4741_s13 = inlined_call_operand.vmem [shape: bf16[34,64], index: 13, kind: input, shape index: {}]   ;;  %s4742_s14 = inlined_call_operand.vmem [shape: bf16[128,96], index: 14, kind: input, shape index: {}]   ;;  %s4743_s15 = inlined_call_operand.vmem [shape: bf16[34,32], index: 15, kind: input, shape index: {}]   ;;  %s4744_s16 = inlined_call_operand.vmem [shape: bf16[64,64], index: 16, kind: input, shape index: {}]   ;;  %s4745_s17 = inlined_call_operand.vmem [shape: bf16[34,32], index: 17, kind: input, shape index: {}]   ;;  %s4746_s18 = inlined_call_operand.vmem [shape: bf16[32,48], index: 18, kind: input, shape index: {}]   ;;  %s4747_s19 = inlined_call_operand.vmem [shape: f32[2,1,1], index: 19, kind: output, shape index: {}]  }
   0x1   :  { %4749 = sst [smem:[#allocation2_spill]] %s4728_s0  ;;  %s4226_s0 = smov 0  }
   0x2   :  { %4750 = sst [smem:[#allocation3_spill]] %s4729_s1 }
   0x3   :  { %4751 = sst [smem:[#allocation4_spill]] %s4730_s2 }
   0x4   :  { %4752 = sst [smem:[#allocation5_spill]] %s4731_s3 }
   0x5 LB: > { %s3425_s30 = sadd.s32 4294967295, %s4122_s0   ;;  %p3429_p0 = scmp.ge.s32.totalorder %s4122_s0, 1  ;;  %s4122_s0 = sphi %s4226_s0, %s29_s0  }
   0x6   : > { %p627_p1 = scmp.lt.s32.totalorder %s4122_s0, 3 }
   0x8   : > { %p628_p2 = pnand %p3429_p0, %p627_p1 }
   0x9   : > { %p721_p3 = scmp.lt.s32.totalorder (!%p628_p2), %s3425_s30, 1  ;;  %s4753_s22 = sld [smem:[#allocation3_spill]] (!%p628_p2) }
   0xa   : > { %631 = sbr.rel (%p628_p2) target bundleno = 2384 (0x950), region = 96  ;;  %s4754_s3 = sld [smem:[#allocation2_spill]] (!%p628_p2) }
   0xb   : > { %s4755_s29 = sld [smem:[#allocation4_spill]] (!%p628_p2) }
   0xf   : > { %s4764_s30 = smov (!%p721_p3, %s3425_s30), 1  ;;  %vm924_vm0 = vcmask 1042432   ;;  %vm831_vm1 = vsmask.f32 7424  ;;  %vm1050_vm2 = vcmask 1046528   ;;  %vm905_vm3 = vcmask 441344  }
  0x10   : > { %s4096_s20 = smul.u32 84, %s4764_s30  ;;  %v4016_v58 = vld [vmem:[%s4740_s12 + $0x38] sm:$0xff]  ;;  %v4015_v59 = vld [vmem:[%s4740_s12 + $0x30] sm:$0xff]  ;;  %s741_s21 = scalar_lea.vmem %s4732_s4, %s4764_s30 }
  0x11   : > { %s4095_s23 = smul.u32 52, %s4764_s30  ;;  %1527 = vmatpush.bf16.msra.mxu3 %v4016_v58  ;;  %s768_s1 = scalar_lea.vmem %s4747_s19, %s4764_s30 }
  0x12   : > { %s4240_s2 = scalar_lea.vmem %s4753_s22, %s4096_s20  ;;  %s733_s20 = scalar_lea.vmem %s4755_s29, %s4764_s30 }
  0x13   : > { %v3442_v0 = vld [vmem:[%s4240_s2 + $0x34] sm:$0x7]  ;;  %v789_v1 = vld [vmem:[%s4240_s2 + $0x18] sm:$0x7]  ;;  %v3509_v2 = vld [vmem:[%s4240_s2 + $0x50] sm:$0x7]  ;;  %s4249_s26 = scalar_lea.vmem %s4754_s3, %s4095_s23 }
  0x14   : > { %v897_v3 = vunpack.c.l.b16 %v3442_v0  ;;  %v980_v4 = vunpack.c.l.b16 %v789_v1  ;;  %v1077_v5 = vunpack.c.l.b16 %v3509_v2  ;;  %v3994_v9 = vld [vmem:[%s4249_s26] sm:$0xff]  ;;  %v4005_v13 = vld [vmem:[%s4240_s2 + $0x2c] sm:$0xff]  ;;  %v4006_v28 = vld [vmem:[%s4240_s2 + $0x38] sm:$0xff]  ;;  %s4097_s24 = smul.u32 120, %s4764_s30  ;;  %s4762_s3 = sld [smem:[#allocation5_spill]] }
  0x15   : > { %v4002_v14 = vld [vmem:[%s4240_s2 + $0x10] sm:$0xff]  ;;  %v3995_v15 = vld [vmem:[%s4249_s26 + $0x8] sm:$0xff]  ;;  %v835_v16 = vshll.u32 %v3994_v9, 16  ;;  %v833_v20 = vshrl.u32 %v3994_v9, 16  ;;  %v4007_v23 = vld [vmem:[%s4240_s2 + $0x40] sm:$0xff]  ;;  %v1051_v29 = vrot.slane %v3994_v9, 1  ;;  %1528 = vmatpush.bf16.msra.mxu3 %v4015_v59 }
  0x16   : > { %v901_v6 = vpack.c.b16 %v897_v3, %v897_v3  ;;  %v984_v7 = vpack.c.b16 %v980_v4, %v980_v4  ;;  %v1081_v8 = vpack.c.b16 %v1077_v5, %v1077_v5  ;;  %v4008_v17 = vld [vmem:[%s4240_s2 + $0x48] sm:$0xff]  ;;  %v840_v22 = vshll.u32 %v3995_v15, 16  ;;  %v4003_v24 = vld [vmem:[%s4240_s2 + $0x1c] sm:$0xff]  ;;  %v3996_v33 = vld [vmem:[%s4249_s26 + $0x10] sm:$0xff]  ;;  %s4098_s22 = smul.u32 144, %s4764_s30 }
  0x17   : > { %v4004_v18 = vld [vmem:[%s4240_s2 + $0x24] sm:$0xff]  ;;  %v837_v21 = vrot.slane %v835_v16, 1  ;;  %v1052_v30 = vrot.slane %v3995_v15, 1  ;;  %v844_v34 = vshrl.u32 %v3995_v15, 16  ;;  %v848_v35 = vshll.u32 %v3996_v33, 16  ;;  %v3997_v41 = vld [vmem:[%s4249_s26 + $0x18] sm:$0xff] }
  0x18   : > { %v926_v10 = vsel %vm924_vm0, %v901_v6, 0  ;;  %v1001_v11 = vsel %vm924_vm0, %v984_v7, 0  ;;  %v1104_v12 = vsel %vm924_vm0, %v1081_v8, 0  ;;  %v4001_v19 = vld [vmem:[%s4240_s2 + $0x8] sm:$0xff]  ;;  %v4000_v25 = vld [vmem:[%s4240_s2] sm:$0xff]  ;;  %v842_v27 = vrot.slane %v840_v22, 1 }
  0x19   : > { %932 = vmatpush.bf16.msra.mxu0 %v926_v10  ;;  %1007 = vmatpush.bf16.msra.mxu1 %v1001_v11  ;;  %v838_v26 = vor.u32 %v837_v21, %v833_v20  ;;  %v1053_v32 = vsel %vm1050_vm2, %v1051_v29, %v1052_v30  ;;  %v850_v37 = vrot.slane %v848_v35, 1  ;;  %v1054_v38 = vrot.slane %v3996_v33, 1  ;;  %v3998_v49 = vld [vmem:[%s4249_s26 + $0x20] sm:$0xff]  ;;  %v3999_v57 = vld [vmem:[%s4249_s26 + $0x28] sm:$0xff]  ;;  %v782_v1 = vld [vmem:[%s4249_s26 + $0x30] sm:$0x1] }
  0x1a   : > { %1110 = vmatpush.bf16.msra.mxu2 %v1104_v12  ;;  %v846_v36 = vor.u32 %v844_v34, %v842_v27  ;;  %v852_v42 = vshrl.u32 %v3996_v33, 16  ;;  %v856_v43 = vshll.u32 %v3997_v41, 16  ;;  %v1056_v46 = vrot.slane %v3997_v41, 1  ;;  %v4011_v16 = vld [vmem:[%s4740_s12 + $0x10] sm:$0xff]  ;;  %s738_s26 = scalar_lea.vmem %s4762_s3, %s4097_s24  ;;  %s4589_s24 = scalar_lea.vmem %s4733_s5, %s4098_s22 }
  0x1b   : > { %v843_v31 = vsel %vm831_vm1, %v838_v26, %v842_v27  ;;  %v1055_v40 = vsel %vm1050_vm2, %v1052_v30, %v1054_v38  ;;  %v860_v50 = vshrl.u32 %v3997_v41, 16  ;;  %v864_v51 = vshll.u32 %v3998_v49, 16  ;;  %s4099_s27 = smul.u32 96, %s4764_s30 }
  0x1c   : > { %v851_v39 = vsel %vm831_vm1, %v846_v36, %v850_v37  ;;  %v854_v44 = vor.u32 %v852_v42, %v850_v37  ;;  %v858_v45 = vrot.slane %v856_v43, 1  ;;  %v1057_v48 = vsel %vm1050_vm2, %v1054_v38, %v1056_v46  ;;  %s4100_s23 = smul.u32 72, %s4764_s30 }
  0x1d   : > { %933 = vmatpush.bf16.msra.mxu0 %v4005_v13  ;;  %1008 = vmatpush.bf16.msra.mxu1 %v4002_v14  ;;  %v866_v53 = vrot.slane %v864_v51, 1  ;;  %v1058_v54 = vrot.slane %v3998_v49, 1  ;;  %v868_v60 = vshrl.u32 %v3998_v49, 16  ;;  %v872_v61 = vshll.u32 %v3999_v57, 16  ;;  %v4014_v13 = vld [vmem:[%s4740_s12 + $0x28] sm:$0xff]  ;;  %v4013_v14 = vld [vmem:[%s4740_s12 + $0x20] sm:$0xff]  ;;  %s754_s22 = scalar_lea.vmem %s4735_s7, %s4099_s27 }
  0x1e   : > { %1111 = vmatpush.bf16.msra.mxu2 %v4008_v17  ;;  %v859_v47 = vsel %vm831_vm1, %v854_v44, %v858_v45  ;;  %v862_v52 = vor.u32 %v860_v50, %v858_v45  ;;  %v1060_v0 = vrot.slane %v3999_v57, 1  ;;  %v823_v3 = vunpack.c.l.b16 %v782_v1  ;;  %1529 = vmatpush.bf16.msra.mxu3 %v4014_v13  ;;  %v4010_v17 = vld [vmem:[%s4740_s12 + $0x8] sm:$0xff] }
  0x1f   : > { %v1059_v56 = vsel %vm1050_vm2, %v1056_v46, %v1058_v54  ;;  %v870_v62 = vor.u32 %v868_v60, %v866_v53  ;;  %v874_v63 = vrot.slane %v872_v61, 1  ;;  %v876_v6 = vshrl.u32 %v3999_v57, 16 }
  0x20   : > { %v867_v55 = vsel %vm831_vm1, %v862_v52, %v866_v53  ;;  %v1061_v4 = vsel %vm1050_vm2, %v1058_v54, %v1060_v0  ;;  %v830_v5 = vpack.c.b16 %v823_v3, %v823_v3  ;;  %v1197_v21 = vlaneseq }
  0x21   : > { %934 = vmatpush.bf16.msra.mxu0 %v4004_v18  ;;  %1009 = vmatpush.bf16.msra.mxu1 %v4001_v19  ;;  %v875_v2 = vsel %vm831_vm1, %v870_v62, %v874_v63  ;;  %v878_v8 = vor.u32 %v876_v6, %v874_v63  ;;  %v4009_v18 = vld [vmem:[%s4740_s12] sm:$0xff] }
  0x22   : > { %1112 = vmatpush.bf16.msra.mxu2 %v4007_v23  ;;  %v880_v7 = vshll.u32 %v830_v5, 16  ;;  %v1062_v10 = vrot.slane %v830_v5, 1  ;;  %1530 = vmatpush.bf16.msra.mxu3 %v4013_v14  ;;  %v4325_v22 = vshrl.u32 %v1197_v21, 7 }
  0x24   : > { %v1063_v12 = vsel %vm1050_vm2, %v1060_v0, %v1062_v10  ;;  %v1207_v27 = vand.u32 65535, %v4325_v22  ;;  %v4338_v42 = vadd.s32 8, %v4325_v22  ;;  %v4358_v61 = vadd.s32 16, %v4325_v22 }
  0x25   : > { %935 = vmatpush.bf16.msra.mxu0 %v4003_v24  ;;  %1010 = vmatpush.bf16.msra.mxu1 %v4000_v25  ;;  %v4125_v10 = vmov 0.0  }
  0x26   : > { %1113 = vmatpush.bf16.msra.mxu2 %v4006_v28  ;;  %v1208_v28 = vshrl.u32 %v4325_v22, 16  ;;  %v1211_v29 = vmul.u32 43690, %v1207_v27  ;;  %v1237_v50 = vshrl.u32 %v4338_v42, 16  ;;  %2078 = vadd.xlane.f32.xlu0 %v4125_v10 }
  0x27   : > { %2074 = vadd.xlane.f32.xlu2 %v4125_v10 }
  0x28   : > { %3479 = vmatmul.msk.bf16.vlgmr.msra.gmra.mxu0 %vm905_vm3, %v843_v31  ;;  %3497 = vmatmul.msk.bf16.vlgmr.msra.gmra.mxu1 %vm905_vm3, %v3994_v9  ;;  %v882_v9 = vrot.slane %v880_v7, 1  ;;  %v4334_v31 = vld [vmem:[%s733_s20] ss:$0 sm:$0xff]  ;;  %v1214_v34 = vshll.u32 %v1211_v29, 16  ;;  %v1213_v36 = vmul.u32 43690, %v1208_v28  ;;  %v1215_v59 = vshrl.u32 %v1211_v29, 16  ;;  %s762_s20 = scalar_lea.vmem %s4737_s9, %s4100_s23 }
  0x29   : > { %3522 = vmatmul.msk.bf16.vlgmr.msra.gmra.mxu2 %vm905_vm3, %v1053_v32  ;;  %v1210_v32 = vmul.u32 43691, %v1207_v27  ;;  %v1242_v5 = vmul.u32 43690, %v1237_v50 }
  0x2a   : > { %v883_v11 = vsel %vm831_vm1, %v878_v8, %v882_v9 }
  0x2b   : > { %vm1218_vm4 = vc.u32 %v1210_v32, %v1214_v34 }
  0x38   : > { %3480 = vmatmul.msk.bf16.gmra.mxu0 %vm905_vm3, %v851_v39  ;;  %3498 = vmatmul.msk.bf16.gmra.mxu1 %vm905_vm3, %v3995_v15  ;;  %v4012_v15 = vld [vmem:[%s4740_s12 + $0x18] sm:$0xff]  ;;  %v4124_v39 = vmov 0  }
  0x39   : > { %3523 = vmatmul.msk.bf16.gmra.mxu2 %vm905_vm3, %v1055_v40  ;;  %1531 = vmatpush.bf16.msra.mxu3 %v4012_v15  ;;  %v1219_v40 = vsel %vm1218_vm4, 1, %v4124_v39 }
  0x3d   : > { %1532 = vmatpush.bf16.msra.mxu3 %v4011_v16 }
  0x41   : > { %1533 = vmatpush.bf16.msra.mxu3 %v4010_v17 }
  0x45   : > { %1534 = vmatpush.bf16.msra.mxu3 %v4009_v18 }
  0x48   : > { %3481 = vmatmul.msk.bf16.gmra.mxu0 %vm905_vm3, %v859_v47  ;;  %3499 = vmatmul.msk.bf16.gmra.mxu1 %vm905_vm3, %v3996_v33  ;;  %v1212_v33 = vmul.u32 43691, %v1208_v28  ;;  %v1236_v47 = vand.u32 65535, %v4338_v42 }
  0x49   : > { %3524 = vmatmul.msk.bf16.gmra.mxu2 %vm905_vm3, %v1057_v48 }
  0x4a   : > { %v1216_v37 = vshll.u32 %v1212_v33, 16  ;;  %v1240_v52 = vmul.u32 43690, %v1236_v47  ;;  %v1217_v6 = vshrl.u32 %v1212_v33, 16 }
  0x4c   : > { %v1244_v29 = vshrl.u32 %v1240_v52, 16 }
  0x58   : > { %3482 = vmatmul.msk.bf16.gmra.mxu0 %vm905_vm3, %v867_v55  ;;  %3500 = vmatmul.msk.bf16.gmra.mxu1 %vm905_vm3, %v3997_v41  ;;  %v1220_v41 = vadd.s32 %v1214_v34, %v1210_v32  ;;  %v1239_v55 = vmul.u32 43691, %v1236_v47 }
  0x59   : > { %3525 = vmatmul.msk.bf16.gmra.mxu2 %vm905_vm3, %v1059_v56  ;;  %v4351_v56 = vmul.u32 43691, %v1237_v50 }
  0x5a   : > { %vm1222_vm5 = vc.u32 %v1220_v41, %v1216_v37 }
  0x5b   : > { %v1223_v51 = vsel %vm1222_vm5, 1, %v4124_v39  ;;  %v1245_v0 = vshll.u32 %v4351_v56, 16  ;;  %v1246_v41 = vshrl.u32 %v4351_v56, 16 }
  0x68   : > { %3483 = vmatmul.msk.bf16.gmra.mxu0 %vm905_vm3, %v875_v2  ;;  %3501 = vmatmul.msk.bf16.gmra.mxu1 %vm905_vm3, %v3998_v49  ;;  %v1221_v49 = vadd.s32 %v1219_v40, %v1213_v36 }
  0x69   : > { %3526 = vmatmul.msk.bf16.gmra.mxu2 %vm905_vm3, %v1061_v4  ;;  %v1265_v4 = vand.u32 65535, %v4358_v61 }
  0x6a   : > { %v1225_v60 = vadd.s32 %v1223_v51, %v1221_v49  ;;  %v4390_v49 = vadd.s32 32, %v4325_v22 }
  0x6b   : > { %v1268_v13 = vmul.u32 43691, %v1265_v4 }
  0x6c   : > { %v1226_v7 = vadd.s32 %v1225_v60, %v1215_v59 }
  0x6e   : > { %v1227_v21 = vadd.s32 %v1226_v7, %v1217_v6 }
  0x70   : > { %v1228_v40 = vshrl.u32 %v1227_v21, 4 }
  0x72   : > { %v1229_v59 = vmul.u32 24, %v1228_v40 }
  0x74   : > { %v4400_v6 = vsub.s32 %v4325_v22, %v1229_v59 }
  0x76   : > { %vm1378_vm12 = vcmp.ne.s32.totalorder %v4400_v6, 0  ;;  %vm1384_vm13 = vcmp.lt.s32.totalorder %v4400_v6, 0 }
  0x77   : > { %vm4440_vm0 = vmand %vm1384_vm13, %vm1378_vm12 }
  0x78   : > { %3484 = vmatmul.msk.bf16.gmra.mxu0 %vm905_vm3, %v883_v11  ;;  %3502 = vmatmul.msk.bf16.gmra.mxu1 %vm905_vm3, %v3999_v57  ;;  %v1243_v57 = vshll.u32 %v1240_v52, 16  ;;  %v1266_v11 = vshrl.u32 %v4358_v61, 16 }
  0x79   : > { %3527 = vmatmul.msk.bf16.gmra.mxu2 %vm905_vm3, %v1063_v12  ;;  %v1269_v12 = vmul.u32 43690, %v1265_v4  ;;  %v1324_v4 = vshrl.u32 %v4390_v49, 16 }
  0x7a   : > { %vm1247_vm6 = vc.u32 %v1239_v55, %v1243_v57  ;;  %v1249_v1 = vadd.s32 %v1243_v57, %v1239_v55  ;;  %v4364_v15 = vmul.u32 43691, %v1266_v11  ;;  %v1271_v33 = vmul.u32 43690, %v1266_v11 }
  0x7b   : > { %v1248_v8 = vsel %vm1247_vm6, 1, %v4124_v39  ;;  %v1272_v16 = vshll.u32 %v1269_v12, 16 }
  0x7c   : > { %vm1251_vm7 = vc.u32 %v1249_v1, %v1245_v0  ;;  %v1250_v14 = vadd.s32 %v1248_v8, %v1242_v5  ;;  %v1274_v27 = vshll.u32 %v4364_v15, 16  ;;  %v1273_v0 = vshrl.u32 %v1269_v12, 16 }
  0x7d   : > { %v1252_v18 = vsel %vm1251_vm7, 1, %v4124_v39  ;;  %vm1276_vm8 = vc.u32 %v1268_v13, %v1272_v16  ;;  %v1278_v28 = vadd.s32 %v1272_v16, %v1268_v13  ;;  %v1275_v8 = vshrl.u32 %v4364_v15, 16 }
  0x7e   : > { %v1277_v34 = vsel %vm1276_vm8, 1, %v4124_v39 }
  0x7f   : > { %vm1280_vm9 = vc.u32 %v1278_v28, %v1274_v27  ;;  %v1279_v47 = vadd.s32 %v1277_v34, %v1271_v33 }
  0x80   : > { %v1281_v51 = vsel %vm1280_vm9, 1, %v4124_v39 }
  0x81   : > { %v1283_v1 = vadd.s32 %v1281_v51, %v1279_v47 }
  0x83   : > { %v1284_v13 = vadd.s32 %v1283_v1, %v1273_v0 }
  0x85   : > { %v1285_v33 = vadd.s32 %v1284_v13, %v1275_v8 }
  0xa5   : > { %v937_v19 = vpop.f32.mrf.mxu0  ;;  %v1012_v20 = vpop.f32.mrf.mxu1 }
  0xa6   : > { %v1013_v24 = vadd.f32 %v1012_v20, %v937_v19 }
  0xac   : > { %v1115_v23 = vpop.f32.mrf.mxu2 }
  0xad   : > { %v939_v25 = vpop.f32.mrf.mxu0  ;;  %v1014_v26 = vpop.f32.mrf.mxu1  ;;  %v1145_v30 = vadd.f32 %v1115_v23, %v1013_v24  ;;  %v4371_v23 = vadd.s32 24, %v4325_v22 }
  0xae   : > { %v1015_v35 = vadd.f32 %v1014_v26, %v939_v25 }
  0xaf   : > { %v4341_v43 = vadd.f32 %v4334_v31, %v1145_v30  ;;  %v1254_v30 = vadd.s32 %v1252_v18, %v1250_v14  ;;  %v1295_v36 = vshrl.u32 %v4371_v23, 16  ;;  %v4407_v14 = vadd.s32 40, %v4325_v22 }
  0xb0   : > { %v4409_v18 = vmul.u32 43691, %v1324_v4 }
  0xb1   : > { %v1173_v53 = vmax.f32 %v4341_v43, 0.0  ;;  %v4393_v55 = vmul.u32 43691, %v1295_v36  ;;  %v1352_v27 = vand.u32 65535, %v4407_v14 }
  0xb2   : > { %v1332_v34 = vshll.u32 %v4409_v18, 16 }
  0xb3   : > { %v4427_v51 = vmul.u32 43690, %v1352_v27  ;;  %v1355_v0 = vmul.u32 43691, %v1352_v27 }
  0xb4   : > { %v1117_v38 = vpop.f32.mrf.mxu2 }
  0xb5   : > { %v1146_v44 = vadd.f32 %v1117_v38, %v1015_v35  ;;  %v942_v45 = vpop.f32.mrf.mxu0  ;;  %v1017_v46 = vpop.f32.mrf.mxu1  ;;  %v1294_v35 = vand.u32 65535, %v4371_v23 }
  0xb6   : > { %v1018_v62 = vadd.f32 %v1017_v46, %v942_v45 }
  0xb7   : > { %v4345_v48 = vadd.f32 %v4334_v31, %v1146_v44  ;;  %v1255_v44 = vadd.s32 %v1254_v30, %v1244_v29  ;;  %v4383_v45 = vmul.u32 43690, %v1294_v35  ;;  %v1297_v52 = vmul.u32 43691, %v1294_v35 }
  0xb9   : > { %v1174_v54 = vmax.f32 %v4345_v48, 0.0  ;;  %v1301_v60 = vshll.u32 %v4383_v45, 16 }
  0xbb   : > { %v1457_v58 = vpack.c.bf16 %v1174_v54, %v1173_v53  ;;  %vm1305_vm10 = vc.u32 %v1297_v52, %v1301_v60 }
  0xbc   : > { %v1120_v63 = vpop.f32.mrf.mxu2  ;;  %v1306_v12 = vsel %vm1305_vm10, 1, %v4124_v39 }
  0xbd   : > { %1535 = vmatmul.bf16.vlgmr.msra.gmra.mxu3 %v1457_v58  ;;  %v944_v2 = vpop.f32.mrf.mxu0  ;;  %v1019_v3 = vpop.f32.mrf.mxu1  ;;  %v1147_v9 = vadd.f32 %v1120_v63, %v1018_v62  ;;  %v1256_v62 = vadd.s32 %v1255_v44, %v1246_v41  ;;  %v1323_v63 = vand.u32 65535, %v4390_v49  ;;  %v1353_v44 = vshrl.u32 %v4407_v14, 16 }
  0xbe   : > { %v1020_v17 = vadd.f32 %v1019_v3, %v944_v2  ;;  %v1303_v2 = vshll.u32 %v4393_v55, 16  ;;  %v1307_v3 = vadd.s32 %v1301_v60, %v1297_v52 }
  0xbf   : > { %v4368_v19 = vadd.f32 %v4334_v31, %v1147_v9  ;;  %v1257_v7 = vshrl.u32 %v1256_v62, 4  ;;  %v1300_v9 = vmul.u32 43690, %v1295_v36  ;;  %v4403_v10 = vmul.u32 43690, %v1323_v63 }
  0xc0   : > { %vm1309_vm11 = vc.u32 %v1307_v3, %v1303_v2  ;;  %v4444_v1 = vmul.u32 43691, %v1353_v44  ;;  %v1359_v2 = vshll.u32 %v4427_v51, 16  ;;  %v1286_v3 = vshrl.u32 %v1285_v33, 4 }
  0xc1   : > { %v1175_v37 = vmax.f32 %v4368_v19, 0.0  ;;  %v1258_v29 = vmul.u32 24, %v1257_v7  ;;  %v1310_v30 = vsel %vm1309_vm11, 1, %v4124_v39 }
  0xc2   : > { %vm1363_vm4 = vc.u32 %v1355_v0, %v1359_v2 }
  0xc3   : > { %v1259_v59 = vsub.s32 %v4338_v42, %v1258_v29 }
  0xc4   : > { %v1122_v20 = vpop.f32.mrf.mxu2 }
  0xc5   : > { %v1148_v24 = vadd.f32 %v1122_v20, %v1020_v17  ;;  %v947_v25 = vpop.f32.mrf.mxu0  ;;  %v1022_v26 = vpop.f32.mrf.mxu1  ;;  %v1326_v17 = vmul.u32 43691, %v1323_v63  ;;  %v1330_v20 = vshll.u32 %v4403_v10, 16  ;;  %vm1379_vm3 = vcmp.ne.s32.totalorder %v1259_v59, 0 }
  0xc6   : > { %v1023_v57 = vadd.f32 %v1022_v26, %v947_v25  ;;  %v1308_v26 = vadd.s32 %v1306_v12, %v1300_v9  ;;  %v1361_v12 = vshll.u32 %v4444_v1, 16  ;;  %vm1385_vm5 = vcmp.lt.s32.totalorder %v1259_v59, 0 }
  0xc7   : > { %v4375_v32 = vadd.f32 %v4334_v31, %v1148_v24  ;;  %vm1334_vm14 = vc.u32 %v1326_v17, %v1330_v20  ;;  %v1336_v35 = vadd.s32 %v1330_v20, %v1326_v17  ;;  %v1287_v17 = vmul.u32 24, %v1286_v3  ;;  %vm4459_vm8 = vmand %vm1385_vm5, %vm1379_vm3 }
  0xc8   : > { %v1312_v47 = vadd.s32 %v1310_v30, %v1308_v26  ;;  %v1358_v26 = vmul.u32 43690, %v1353_v44 }
  0xc9   : > { %v1176_v38 = vmax.f32 %v4375_v32, 0.0  ;;  %vm1338_vm15 = vc.u32 %v1336_v35, %v1332_v34  ;;  %v1397_v35 = vadd.s32 24, %v1259_v59  ;;  %v1288_v43 = vsub.s32 %v4358_v61, %v1287_v17 }
  0xca   : > { %v1339_v9 = vsel %vm1338_vm15, 1, %v4124_v39 }
  0xcb   : > { %v1458_v46 = vpack.c.bf16 %v1176_v38, %v1175_v37  ;;  %vm1380_vm9 = vcmp.ne.s32.totalorder %v1288_v43, 0  ;;  %vm1386_vm10 = vcmp.lt.s32.totalorder %v1288_v43, 0 }
  0xcc   : > { %v1125_v50 = vpop.f32.mrf.mxu2  ;;  %vm4474_vm12 = vmand %vm1386_vm10, %vm1380_vm9 }
  0xcd   : > { %1540 = vmatmul.bf16.gmra.mxu3 %v1458_v46  ;;  %v949_v56 = vpop.f32.mrf.mxu0  ;;  %v1024_v58 = vpop.f32.mrf.mxu1  ;;  %v1149_v5 = vadd.f32 %v1125_v50, %v1023_v57  ;;  %v1302_v46 = vshrl.u32 %v4383_v45, 16  ;;  %v1329_v50 = vmul.u32 43690, %v1324_v4  ;;  %v1335_v57 = vsel %vm1334_vm14, 1, %v4124_v39 }
  0xce   : > { %v1025_v11 = vadd.f32 %v1024_v58, %v949_v56  ;;  %v1396_v58 = vadd.s32 24, %v4400_v6  ;;  %v1304_v4 = vshrl.u32 %v4393_v55, 16  ;;  %v1331_v55 = vshrl.u32 %v4403_v10, 16 }
  0xcf   : > { %v4413_v21 = vadd.f32 %v4334_v31, %v1149_v5  ;;  %v1313_v5 = vadd.s32 %v1312_v47, %v1302_v46  ;;  %v1337_v7 = vadd.s32 %v1335_v57, %v1329_v50 }
  0xd1   : > { %v1177_v36 = vmax.f32 %v4413_v21, 0.0  ;;  %v1314_v20 = vadd.s32 %v1313_v5, %v1304_v4  ;;  %v1398_v5 = vadd.s32 24, %v1288_v43 }
  0xd4   : > { %v1127_v16 = vpop.f32.mrf.mxu2 }
  0xd5   : > { %v1150_v15 = vadd.f32 %v1127_v16, %v1025_v11  ;;  %v952_v24 = vpop.f32.mrf.mxu0  ;;  %v1027_v25 = vpop.f32.mrf.mxu1  ;;  %v1402_v11 = vsel %vm4440_vm0, %v1396_v58, %v4400_v6  ;;  %v1365_v16 = vadd.s32 %v1359_v2, %v1355_v0  ;;  %v1364_v6 = vsel %vm1363_vm4, 1, %v4124_v39 }
  0xd6   : > { %v1028_v40 = vadd.f32 %v1027_v25, %v952_v24  ;;  %vm1408_vm6 = vcmp.lt.s32.totalorder %v1402_v11, 16  ;;  %v1366_v50 = vadd.s32 %v1364_v6, %v1358_v26  ;;  %v1403_v58 = vsel %vm4459_vm8, %v1397_v35, %v1259_v59 }
  0xd7   : > { %v4418_v28 = vadd.f32 %v4334_v31, %v1150_v15  ;;  %v1341_v15 = vadd.s32 %v1339_v9, %v1337_v7  ;;  %vm1367_vm7 = vc.u32 %v1365_v16, %v1361_v12  ;;  %vm1409_vm11 = vcmp.lt.s32.totalorder %v1403_v58, 16 }
  0xd9   : > { %v1178_v41 = vmax.f32 %v4418_v28, 0.0  ;;  %v1342_v44 = vadd.s32 %v1341_v15, %v1331_v55 }
  0xdb   : > { %v1459_v52 = vpack.c.bf16 %v1178_v41, %v1177_v36 }
  0xdc   : > { %v1130_v56 = vpop.f32.mrf.mxu2 }
  0xdd   : > { %v1151_v60 = vadd.f32 %v1130_v56, %v1028_v40  ;;  %1545 = vmatmul.bf16.gmra.mxu3 %v1459_v52  ;;  %v954_v45 = vpop.f32.mrf.mxu0  ;;  %v1029_v62 = vpop.f32.mrf.mxu1  ;;  %v1333_v40 = vshrl.u32 %v4409_v18, 16  ;;  %v1368_v52 = vsel %vm1367_vm7, 1, %v4124_v39 }
  0xde   : > { %v1030_v24 = vadd.f32 %v1029_v62, %v954_v45  ;;  %v1360_v62 = vshrl.u32 %v4427_v51, 16  ;;  %v1370_v63 = vadd.s32 %v1368_v52, %v1366_v50 }
  0xdf   : > { %v1167_v8 = vadd.f32 %v4334_v31, %v1151_v60  ;;  %v1343_v61 = vadd.s32 %v1342_v44, %v1333_v40 }
  0xe0   : > { %v1371_v9 = vadd.s32 %v1370_v63, %v1360_v62 }
  0xe1   : > { %v1179_v13 = vmax.f32 %v1167_v8, 0.0  ;;  %v1362_v8 = vshrl.u32 %v4444_v1, 16 }
  0xe3   : > { %v1185_v25 = vsub.f32 %v1173_v53, %v1179_v13  ;;  %v1315_v53 = vshrl.u32 %v1314_v20, 4 }
  0xe4   : > { %v1132_v27 = vpop.f32.mrf.mxu2 }
  0xe5   : > { %v1152_v29 = vadd.f32 %v1132_v27, %v1030_v24  ;;  %v957_v30 = vpop.f32.mrf.mxu0  ;;  %v1032_v33 = vpop.f32.mrf.mxu1  ;;  %v1191_v34 = vand.u32 2147483647, %v1185_v25  ;;  %v1316_v60 = vmul.u32 24, %v1315_v53 }
  0xe6   : > { %v1033_v57 = vadd.f32 %v1032_v33, %v957_v30 }
  0xe7   : > { %v1168_v46 = vadd.f32 %v4334_v31, %v1152_v29  ;;  %v1426_v47 = vsel %vm1408_vm6, %v1191_v34, 0.0  ;;  %v1317_v48 = vsub.s32 %v4371_v23, %v1316_v60  ;;  %v1372_v23 = vadd.s32 %v1371_v9, %v1362_v8 }
  0xe8   : > { %1432 = vadd.xlane.f32.xlu0 %v1426_v47 }
  0xe9   : > { %v1180_v56 = vmax.f32 %v1168_v46, 0.0  ;;  %vm1381_vm13 = vcmp.ne.s32.totalorder %v1317_v48, 0  ;;  %vm1387_vm14 = vcmp.lt.s32.totalorder %v1317_v48, 0  ;;  %v1399_v24 = vadd.s32 24, %v1317_v48 }
  0xea   : > { %vm1393_vm0 = vmand %vm1387_vm14, %vm1381_vm13  ;;  %v1373_v29 = vshrl.u32 %v1372_v23, 4  ;;  %v4019_v23 = vld [vmem:[%s4739_s11 + $0x10] sm:$0xff]  ;;  %vm1772_vm13 = vcmask 654336   ;;  %vm2210_vm14 = vcmask 523264  }
  0xeb   : > { %v1460_v45 = vpack.c.bf16 %v1180_v56, %v1179_v13  ;;  %v1186_v18 = vsub.f32 %v1174_v54, %v1180_v56  ;;  %v1344_v54 = vshrl.u32 %v1343_v61, 4  ;;  %v1404_v13 = vsel %vm4474_vm12, %v1398_v5, %v1288_v43 }
  0xec   : > { %v1135_v0 = vpop.f32.mrf.mxu2  ;;  %vm1410_vm15 = vcmp.lt.s32.totalorder %v1404_v13, 16  ;;  %v1374_v35 = vmul.u32 24, %v1373_v29  ;;  %vm1604_vm12 = vcmask 785408   ;;  %v4035_v29 = vld [vmem:[%s738_s26 + $0x70] sm:$0xff] }
  0xed   : > { %v1153_v2 = vadd.f32 %v1135_v0, %v1033_v57  ;;  %1550 = vmatmul.bf16.gmra.mxu3 %v1460_v45  ;;  %v959_v39 = vpop.f32.mrf.mxu0  ;;  %v1034_v3 = vpop.f32.mrf.mxu1  ;;  %v1192_v4 = vand.u32 2147483647, %v1186_v18  ;;  %v1345_v12 = vmul.u32 24, %v1344_v54 }
  0xee   : > { %v1035_v16 = vadd.f32 %v1034_v3, %v959_v39  ;;  %v1375_v46 = vsub.s32 %v4407_v14, %v1374_v35  ;;  %1946 = vmatpush.bf16.msrb.mxu3 %v4035_v29  ;;  %v4032_v35 = vld [vmem:[%s738_s26 + $0x58] sm:$0xff] }
  0xef   : > { %v1169_v51 = vadd.f32 %v4334_v31, %v1153_v2  ;;  %v1427_v7 = vsel %vm1409_vm11, %v1192_v4, 0.0  ;;  %v1346_v26 = vsub.s32 %v4390_v49, %v1345_v12 }
  0xf0   : > { %1434 = vadd.xlane.f32.xlu0 %v1427_v7  ;;  %vm1383_vm7 = vcmp.ne.s32.totalorder %v1375_v46, 0  ;;  %vm1389_vm8 = vcmp.lt.s32.totalorder %v1375_v46, 0  ;;  %v1401_v61 = vadd.s32 24, %v1375_v46 }
  0xf1   : > { %v1181_v11 = vmax.f32 %v1169_v51, 0.0  ;;  %vm1382_vm3 = vcmp.ne.s32.totalorder %v1346_v26, 0  ;;  %vm1388_vm4 = vcmp.lt.s32.totalorder %v1346_v26, 0  ;;  %v1400_v53 = vadd.s32 24, %v1346_v26  ;;  %vm1395_vm10 = vmand %vm1389_vm8, %vm1383_vm7 }
  0xf2   : > { %vm1394_vm6 = vmand %vm1388_vm4, %vm1382_vm3  ;;  %v1407_v62 = vsel %vm1395_vm10, %v1401_v61, %v1375_v46  ;;  %vm2651_vm3 = vcmask 261120   ;;  %vm3271_vm8 = vcmask 0  }
  0xf3   : > { %v1187_v17 = vsub.f32 %v1175_v37, %v1181_v11  ;;  %v1405_v37 = vsel %vm1393_vm0, %v1399_v24, %v1317_v48  ;;  %v1406_v32 = vsel %vm1394_vm6, %v1400_v53, %v1346_v26  ;;  %vm1413_vm11 = vcmp.lt.s32.totalorder %v1407_v62, 16  ;;  %v4023_v26 = vld [vmem:[%s738_s26 + $0x10] sm:$0xff] }
  0xf4   : > { %v1137_v20 = vpop.f32.mrf.mxu2  ;;  %vm1411_vm5 = vcmp.lt.s32.totalorder %v1405_v37, 16  ;;  %vm1412_vm9 = vcmp.lt.s32.totalorder %v1406_v32, 16  ;;  %v4029_v37 = vld [vmem:[%s738_s26 + $0x40] sm:$0xff]  ;;  %vm3105_vm6 = vcmask 392192  }
  0xf5   : > { %v1154_v55 = vadd.f32 %v1137_v20, %v1035_v16  ;;  %v1193_v15 = vand.u32 2147483647, %v1187_v17  ;;  %v962_v1 = vpop.f32.mrf.mxu0  ;;  %v1037_v25 = vpop.f32.mrf.mxu1  ;;  %v4017_v16 = vld [vmem:[%s4739_s11] sm:$0xff]  ;;  %v4018_v17 = vld [vmem:[%s4739_s11 + $0x8] sm:$0xff]  ;;  %v4020_v20 = vld [vmem:[%s4739_s11 + $0x18] sm:$0xff] }
  0xf6   : > { %v1038_v30 = vadd.f32 %v1037_v25, %v962_v1  ;;  %v4025_v1 = vld [vmem:[%s738_s26 + $0x20] sm:$0xff]  ;;  %v4024_v25 = vld [vmem:[%s738_s26 + $0x18] sm:$0xff] }
  0xf7   : > { %v1170_v27 = vadd.f32 %v4334_v31, %v1154_v55  ;;  %v1428_v6 = vsel %vm1410_vm15, %v1193_v15, 0.0  ;;  %v1574_v55 = vld [vmem:[%s4739_s11 + $0x20] sm:$0x1]  ;;  %1855 = vmatpush.bf16.msrb.mxu2 %v4025_v1 }
  0xf8   : > { %1436 = vadd.xlane.f32.xlu1 %v1428_v6  ;;  %v1598_v15 = vunpack.c.l.b16 %v1574_v55  ;;  %v4021_v6 = vld [vmem:[%s738_s26] sm:$0xff] }
  0xf9   : > { %v1182_v19 = vmax.f32 %v1170_v27, 0.0  ;;  %v4022_v27 = vld [vmem:[%s738_s26 + $0x8] sm:$0xff] }
  0xfa   : > { %v1603_v24 = vpack.c.b16 %v1598_v15, %v1598_v15 }
  0xfb   : > { %v1461_v33 = vpack.c.bf16 %v1182_v19, %v1181_v11  ;;  %v1188_v34 = vsub.f32 %v1176_v38, %v1182_v19  ;;  %1856 = vmatpush.bf16.msrb.mxu2 %v4024_v25  ;;  %v4034_v19 = vld [vmem:[%s738_s26 + $0x68] sm:$0xff] }
  0xfc   : > { %v1140_v10 = vpop.f32.mrf.mxu2  ;;  %1947 = vmatpush.bf16.msrb.mxu3 %v4034_v19 }
  0xfd   : > { %v1155_v43 = vadd.f32 %v1140_v10, %v1038_v30  ;;  %1555 = vmatmul.bf16.gmra.mxu3 %v1461_v33  ;;  %v1194_v49 = vand.u32 2147483647, %v1188_v34  ;;  %v964_v47 = vpop.f32.mrf.mxu0  ;;  %v1039_v50 = vpop.f32.mrf.mxu1  ;;  %v4030_v30 = vld [vmem:[%s738_s26 + $0x48] sm:$0xff]  ;;  %v4033_v33 = vld [vmem:[%s738_s26 + $0x60] sm:$0xff]  ;;  %v4028_v34 = vld [vmem:[%s738_s26 + $0x38] sm:$0xff] }
  0xfe   : > { %v1040_v38 = vadd.f32 %v1039_v50, %v964_v47  ;;  %1788 = vmatpush.bf16.msrb.mxu1 %v4030_v30  ;;  %v4027_v10 = vld [vmem:[%s738_s26 + $0x30] sm:$0xff] }
  0xff   : > { %v1171_v40 = vadd.f32 %v4334_v31, %v1155_v43  ;;  %v1429_v44 = vsel %vm1411_vm5, %v1194_v49, 0.0  ;;  %1857 = vmatpush.bf16.msrb.mxu2 %v4023_v26  ;;  %v4031_v43 = vld [vmem:[%s738_s26 + $0x50] sm:$0xff]  ;;  %v4026_v49 = vld [vmem:[%s738_s26 + $0x28] sm:$0xff]  ;;  %s765_s26 = scalar_lea.vmem %s4738_s10, %s4764_s30 }
 0x100   : > { %1438 = vadd.xlane.f32.xlu1 %v1429_v44  ;;  %1948 = vmatpush.bf16.msrb.mxu3 %v4033_v33 }
 0x101   : > { %v1183_v52 = vmax.f32 %v1171_v40, 0.0 }
 0x102   : > { %1789 = vmatpush.bf16.msrb.mxu1 %v4029_v37 }
 0x103   : > { %v1189_v57 = vsub.f32 %v1177_v36, %v1183_v52  ;;  %1858 = vmatpush.bf16.msrb.mxu2 %v4022_v27 }
 0x104   : > { %v1142_v56 = vpop.f32.mrf.mxu2  ;;  %1949 = vmatpush.bf16.msrb.mxu3 %v4032_v35 }
 0x105   : > { %v1156_v58 = vadd.f32 %v1142_v56, %v1040_v38  ;;  %v1195_v60 = vand.u32 2147483647, %v1189_v57 }
 0x106   : > { %1790 = vmatpush.bf16.msrb.mxu1 %v4028_v34 }
 0x107   : > { %v1172_v45 = vadd.f32 %v4334_v31, %v1156_v58  ;;  %v1430_v14 = vsel %vm1412_vm9, %v1195_v60, 0.0  ;;  %1859 = vmatpush.bf16.msrb.mxu2 %v4021_v6 }
 0x108   : > { %1440 = vadd.xlane.f32.xlu0 %v1430_v14  ;;  %1950 = vmatpush.bf16.msrb.mxu3 %v4031_v43 }
 0x109   : > { %v1184_v18 = vmax.f32 %v1172_v45, 0.0 }
 0x10a   : > { %1791 = vmatpush.bf16.msrb.mxu1 %v4027_v10 }
 0x10b   : > { %v1462_v63 = vpack.c.bf16 %v1184_v18, %v1183_v52  ;;  %v1190_v0 = vsub.f32 %v1178_v41, %v1184_v18 }
 0x10d   : > { %1560 = vmatmul.bf16.gmra.mxu3 %v1462_v63  ;;  %v1196_v21 = vand.u32 2147483647, %v1190_v0 }
 0x10e   : > { %1792 = vmatpush.bf16.msrb.mxu1 %v4026_v49 }
 0x10f   : > { %v1431_v36 = vsel %vm1413_vm11, %v1196_v21, 0.0 }
 0x110   : > { %1442 = vadd.xlane.f32.xlu2 %v1431_v36 }
 0x140   : > { %v1536_v2 = vpop.f32.mrf.mxu3 }
 0x148   : > { %v1538_v39 = vpop.f32.mrf.mxu3 }
 0x149   : > { %v1575_v12 = vpack.c.bf16 %v1538_v39, %v1536_v2 }
 0x150   : > { %v1541_v3 = vpop.f32.mrf.mxu3 }
 0x158   : > { %v1543_v4 = vpop.f32.mrf.mxu3 }
 0x159   : > { %v1576_v13 = vpack.c.bf16 %v1543_v4, %v1541_v3 }
 0x160   : > { %v1546_v5 = vpop.f32.mrf.mxu3 }
 0x168   : > { %v1548_v59 = vpop.f32.mrf.mxu3 }
 0x169   : > { %v1577_v11 = vpack.c.bf16 %v1548_v59, %v1546_v5 }
 0x170   : > { %v1551_v31 = vpop.f32.mrf.mxu3 }
 0x178   : > { %v1553_v48 = vpop.f32.mrf.mxu3 }
 0x179   : > { %v1578_v41 = vpack.c.bf16 %v1553_v48, %v1551_v31 }
 0x180   : > { %v1556_v54 = vpop.f32.mrf.mxu3 }
 0x188   : > { %v1558_v51 = vpop.f32.mrf.mxu3 }
 0x189   : > { %v1579_v28 = vpack.c.bf16 %v1558_v51, %v1556_v54 }
 0x190   : > { %v1561_v7 = vpop.f32.mrf.mxu3 }
 0x198   : > { %v1563_v8 = vpop.f32.mrf.mxu3 }
 0x199   : > { %v1580_v9 = vpack.c.bf16 %v1563_v8, %v1561_v7 }
 0x19b   : > { %1622 = vmatpush.bf16.msrb.mxu0 %v1580_v9 }
 0x19f   : > { %1623 = vmatpush.bf16.msrb.mxu0 %v1579_v28 }
 0x1a3   : > { %1624 = vmatpush.bf16.msrb.mxu0 %v1578_v41 }
 0x1a7   : > { %1625 = vmatpush.bf16.msrb.mxu0 %v1577_v11 }
 0x1ab   : > { %1626 = vmatpush.bf16.msrb.mxu0 %v1576_v13 }
 0x1af   : > { %1627 = vmatpush.bf16.msrb.mxu0 %v1575_v12  ;;  %v4043_v12 = vld [vmem:[%s4742_s14 + $0x38] sm:$0xff] }
 0x1b0   : > { %2159 = vmatpush.bf16.msra.mxu1 %v4043_v12 }
 0x1b2   : > { %3576 = vmatmul.msk.bf16.vlgmr.msrb.gmra.mxu0 %vm1604_vm12, %v4017_v16 }
 0x1c2   : > { %3577 = vmatmul.msk.bf16.gmra.mxu0 %vm1604_vm12, %v4018_v17 }
 0x1d2   : > { %3578 = vmatmul.msk.bf16.gmra.mxu0 %vm1604_vm12, %v4019_v23 }
 0x1e2   : > { %3579 = vmatmul.msk.bf16.gmra.mxu0 %vm1604_vm12, %v4020_v20 }
 0x1f2   : > { %3580 = vmatmul.msk.bf16.gmra.mxu0 %vm1604_vm12, %v1603_v24 }
 0x22f   : > { %v1629_v53 = vpop.f32.mrf.mxu0 }
 0x230   : > { %v1653_v40 = vpack.c.bf16 %v1629_v53, %v1629_v53 }
 0x232   : > { %v1692_v47 = vunpack.c.l.b16 %v1653_v40 }
 0x237   : > { %v1631_v44 = vpop.f32.mrf.mxu0 }
 0x238   : > { %v1654_v46 = vpack.c.bf16 %v1631_v44, %v1631_v44 }
 0x23a   : > { %v1693_v50 = vunpack.c.l.b16 %v1654_v46  ;;  %v4042_v46 = vld [vmem:[%s4742_s14 + $0x30] sm:$0xff] }
 0x23b   : > { %2160 = vmatpush.bf16.msra.mxu1 %v4042_v46 }
 0x23c   : > { %v1701_v52 = vpack.c.b16 %v1693_v50, %v1692_v47  ;;  %v4041_v47 = vld [vmem:[%s4742_s14 + $0x28] sm:$0xff]  ;;  %v4040_v50 = vld [vmem:[%s4742_s14 + $0x20] sm:$0xff] }
 0x23e   : > { %3635 = vmatmul.msk.bf16.vlgmr.msrb.gmra.mxu2 %vm1772_vm13, %v1701_v52  ;;  %v1709_v58 = vshll.u32 %v1701_v52, 16  ;;  %v1892_v18 = vrot.slane %v1701_v52, 1  ;;  %v1707_v63 = vshrl.u32 %v1701_v52, 16  ;;  %v4039_v52 = vld [vmem:[%s4742_s14 + $0x18] sm:$0xff] }
 0x23f   : > { %v1634_v32 = vpop.f32.mrf.mxu0  ;;  %2161 = vmatpush.bf16.msra.mxu1 %v4041_v47 }
 0x240   : > { %v1655_v38 = vpack.c.bf16 %v1634_v32, %v1634_v32  ;;  %v1711_v14 = vrot.slane %v1709_v58, 1  ;;  %v4038_v32 = vld [vmem:[%s4742_s14 + $0x10] sm:$0xff] }
 0x242   : > { %v1694_v60 = vunpack.c.l.b16 %v1655_v38  ;;  %v1712_v2 = vor.u32 %v1711_v14, %v1707_v63  ;;  %v4037_v38 = vld [vmem:[%s4742_s14 + $0x8] sm:$0xff]  ;;  %v4112_v63 = vld [vmem:[%s741_s21] ss:$0 sm:$0xff]  ;;  %s749_s21 = scalar_lea.vmem %s4734_s6, %s4764_s30 }
 0x243   : > { %2162 = vmatpush.bf16.msra.mxu1 %v4040_v50 }
 0x247   : > { %v1636_v57 = vpop.f32.mrf.mxu0  ;;  %2163 = vmatpush.bf16.msra.mxu1 %v4039_v52 }
 0x248   : > { %v1656_v56 = vpack.c.bf16 %v1636_v57, %v1636_v57  ;;  %v4036_v57 = vld [vmem:[%s4742_s14] sm:$0xff] }
 0x24a   : > { %v1695_v61 = vunpack.c.l.b16 %v1656_v56 }
 0x24b   : > { %2164 = vmatpush.bf16.msra.mxu1 %v4038_v32 }
 0x24c   : > { %v1702_v45 = vpack.c.b16 %v1695_v61, %v1694_v60 }
 0x24e   : > { %v1893_v62 = vrot.slane %v1702_v45, 1  ;;  %v1714_v0 = vshll.u32 %v1702_v45, 16  ;;  %3636 = vmatmul.msk.bf16.gmra.mxu2 %vm1772_vm13, %v1702_v45  ;;  %v1718_v7 = vshrl.u32 %v1702_v45, 16 }
 0x24f   : > { %v1639_v21 = vpop.f32.mrf.mxu0  ;;  %2165 = vmatpush.bf16.msra.mxu1 %v4037_v38 }
 0x250   : > { %v1894_v36 = vsel %vm1050_vm2, %v1892_v18, %v1893_v62  ;;  %v1716_v39 = vrot.slane %v1714_v0, 1  ;;  %v1657_v4 = vpack.c.bf16 %v1639_v21, %v1639_v21 }
 0x251   : > { %3669 = vmatmul.msk.bf16.vlgmr.msrb.gmra.mxu3 %vm1772_vm13, %v1894_v36 }
 0x252   : > { %v1717_v3 = vsel %vm831_vm1, %v1712_v2, %v1716_v39  ;;  %v1696_v31 = vunpack.c.l.b16 %v1657_v4  ;;  %v1720_v41 = vor.u32 %v1718_v7, %v1716_v39 }
 0x253   : > { %3611 = vmatmul.msk.bf16.vlgmr.msrb.gmra.mxu1 %vm1772_vm13, %v1717_v3 }
 0x254   : > { %2166 = vmatpush.bf16.msra.mxu1 %v4036_v57 }
 0x257   : > { %v1641_v5 = vpop.f32.mrf.mxu0 }
 0x258   : > { %v1658_v59 = vpack.c.bf16 %v1641_v5, %v1641_v5 }
 0x25a   : > { %v1697_v48 = vunpack.c.l.b16 %v1658_v59 }
 0x25c   : > { %v1703_v54 = vpack.c.b16 %v1697_v48, %v1696_v31 }
 0x25e   : > { %v1895_v51 = vrot.slane %v1703_v54, 1  ;;  %v1722_v8 = vshll.u32 %v1703_v54, 16  ;;  %3637 = vmatmul.msk.bf16.gmra.mxu2 %vm1772_vm13, %v1703_v54  ;;  %v1726_v1 = vshrl.u32 %v1703_v54, 16 }
 0x25f   : > { %v1644_v9 = vpop.f32.mrf.mxu0 }
 0x260   : > { %v1896_v28 = vsel %vm1050_vm2, %v1893_v62, %v1895_v51  ;;  %v1724_v11 = vrot.slane %v1722_v8, 1  ;;  %v1659_v16 = vpack.c.bf16 %v1644_v9, %v1644_v9 }
 0x261   : > { %3670 = vmatmul.msk.bf16.gmra.mxu3 %vm1772_vm13, %v1896_v28 }
 0x262   : > { %v1725_v13 = vsel %vm831_vm1, %v1720_v41, %v1724_v11  ;;  %v1698_v20 = vunpack.c.l.b16 %v1659_v16  ;;  %v1728_v6 = vor.u32 %v1726_v1, %v1724_v11 }
 0x263   : > { %3612 = vmatmul.msk.bf16.gmra.mxu1 %vm1772_vm13, %v1725_v13 }
 0x267   : > { %v1646_v17 = vpop.f32.mrf.mxu0 }
 0x268   : > { %v1660_v23 = vpack.c.bf16 %v1646_v17, %v1646_v17 }
 0x26a   : > { %v1699_v55 = vunpack.c.l.b16 %v1660_v23 }
 0x26c   : > { %v1704_v15 = vpack.c.b16 %v1699_v55, %v1698_v20 }
 0x26e   : > { %v1897_v24 = vrot.slane %v1704_v15, 1  ;;  %v1730_v25 = vshll.u32 %v1704_v15, 16  ;;  %3638 = vmatmul.msk.bf16.gmra.mxu2 %vm1772_vm13, %v1704_v15  ;;  %v1734_v49 = vshrl.u32 %v1704_v15, 16 }
 0x26f   : > { %v1649_v26 = vpop.f32.mrf.mxu0 }
 0x270   : > { %v1898_v27 = vsel %vm1050_vm2, %v1895_v51, %v1897_v24  ;;  %v1732_v29 = vrot.slane %v1730_v25, 1  ;;  %v1661_v30 = vpack.c.bf16 %v1649_v26, %v1649_v26 }
 0x271   : > { %3671 = vmatmul.msk.bf16.gmra.mxu3 %vm1772_vm13, %v1898_v27 }
 0x272   : > { %v1733_v19 = vsel %vm831_vm1, %v1728_v6, %v1732_v29  ;;  %v1700_v37 = vunpack.c.l.b16 %v1661_v30  ;;  %v1736_v40 = vor.u32 %v1734_v49, %v1732_v29 }
 0x273   : > { %3613 = vmatmul.msk.bf16.gmra.mxu1 %vm1772_vm13, %v1733_v19 }
 0x274   : > { %v1705_v33 = vpack.c.b16 %v1700_v37, %v1700_v37 }
 0x276   : > { %v1738_v35 = vshll.u32 %v1705_v33, 16  ;;  %v1899_v10 = vrot.slane %v1705_v33, 1 }
 0x277   : > { %v1651_v34 = vpop.f32.mrf.mxu0 }
 0x278   : > { %v1740_v43 = vrot.slane %v1738_v35, 1  ;;  %v1900_v53 = vsel %vm1050_vm2, %v1897_v24, %v1899_v10 }
 0x27a   : > { %v1741_v44 = vsel %vm831_vm1, %v1736_v40, %v1740_v43 }
 0x281   : > { %3672 = vmatmul.msk.bf16.gmra.mxu3 %vm1772_vm13, %v1900_v53 }
 0x283   : > { %3614 = vmatmul.msk.bf16.gmra.mxu1 %vm1772_vm13, %v1741_v44 }
 0x2c1   : > { %v1861_v56 = vpop.f32.mrf.mxu2 }
 0x2c9   : > { %v1863_v58 = vpop.f32.mrf.mxu2 }
 0x2d0   : > { %v1794_v60 = vpop.f32.mrf.mxu1 }
 0x2d1   : > { %v1862_v45 = vadd.f32 %v1861_v56, %v1794_v60  ;;  %v1866_v18 = vpop.f32.mrf.mxu2 }
 0x2d4   : > { %v1952_v61 = vpop.f32.mrf.mxu3 }
 0x2d5   : > { %v1972_v62 = vadd.f32 %v1952_v61, %v1862_v45 }
 0x2d7   : > { %v1984_v36 = vadd.f32 %v4112_v63, %v1972_v62 }
 0x2d8   : > { %v1796_v14 = vpop.f32.mrf.mxu1 }
 0x2d9   : > { %v1864_v0 = vadd.f32 %v1863_v58, %v1796_v14  ;;  %v1992_v4 = vmax.f32 %v1984_v36, 0.0  ;;  %v1868_v59 = vpop.f32.mrf.mxu2 }
 0x2dc   : > { %v1954_v21 = vpop.f32.mrf.mxu3 }
 0x2dd   : > { %v1973_v2 = vadd.f32 %v1954_v21, %v1864_v0 }
 0x2df   : > { %v1985_v39 = vadd.f32 %v4112_v63, %v1973_v2 }
 0x2e0   : > { %v1799_v3 = vpop.f32.mrf.mxu1 }
 0x2e1   : > { %v1993_v5 = vmax.f32 %v1985_v39, 0.0  ;;  %v1867_v54 = vadd.f32 %v1866_v18, %v1799_v3  ;;  %v1871_v9 = vpop.f32.mrf.mxu2 }
 0x2e3   : > { %v2091_v31 = vpack.c.bf16 %v1993_v5, %v1992_v4  ;;  %v4045_v5 = vld [vmem:[%s4741_s13 + $0x8] sm:$0xff] }
 0x2e4   : > { %v1957_v48 = vpop.f32.mrf.mxu3 }
 0x2e5   : > { %2167 = vmatmul.bf16.vlgmr.msra.gmra.mxu1 %v2091_v31  ;;  %v1974_v7 = vadd.f32 %v1957_v48, %v1867_v54  ;;  %v4051_v54 = vld [vmem:[%s4589_s24 + $0x28] sm:$0xff] }
 0x2e6   : > { %2409 = vmatpush.bf16.msra.mxu3 %v4051_v54 }
 0x2e7   : > { %v1986_v41 = vadd.f32 %v4112_v63, %v1974_v7  ;;  %v4049_v7 = vld [vmem:[%s4589_s24 + $0x18] sm:$0xff] }
 0x2e8   : > { %v1801_v51 = vpop.f32.mrf.mxu1 }
 0x2e9   : > { %v1869_v8 = vadd.f32 %v1868_v59, %v1801_v51  ;;  %v1994_v16 = vmax.f32 %v1986_v41, 0.0  ;;  %v1873_v24 = vpop.f32.mrf.mxu2  ;;  %v2192_v59 = vld [vmem:[%s4741_s13 + $0x10] sm:$0x1]  ;;  %v4050_v51 = vld [vmem:[%s4589_s24 + $0x20] sm:$0xff]  ;;  %v4057_v41 = vld [vmem:[%s4589_s24 + $0x58] sm:$0xff] }
 0x2ea   : > { %v2206_v31 = vunpack.c.l.b16 %v2192_v59  ;;  %2410 = vmatpush.bf16.msra.mxu3 %v4050_v51  ;;  %2350 = vmatpush.bf16.msra.mxu0 %v4057_v41  ;;  %v4064_v59 = vld [vmem:[%s4744_s16] sm:$0xff] }
 0x2ec   : > { %v1959_v28 = vpop.f32.mrf.mxu3  ;;  %v2209_v48 = vpack.c.b16 %v2206_v31, %v2206_v31 }
 0x2ed   : > { %v1975_v11 = vadd.f32 %v1959_v28, %v1869_v8  ;;  %v4048_v8 = vld [vmem:[%s4589_s24 + $0x10] sm:$0xff]  ;;  %v4046_v28 = vld [vmem:[%s4589_s24] sm:$0xff] }
 0x2ee   : > { %2411 = vmatpush.bf16.msra.mxu3 %v4049_v7 }
 0x2ef   : > { %v1987_v13 = vadd.f32 %v4112_v63, %v1975_v11  ;;  %v4056_v11 = vld [vmem:[%s4589_s24 + $0x50] sm:$0xff] }
 0x2f0   : > { %v1804_v12 = vpop.f32.mrf.mxu1  ;;  %2351 = vmatpush.bf16.msra.mxu0 %v4056_v11 }
 0x2f1   : > { %v1995_v17 = vmax.f32 %v1987_v13, 0.0  ;;  %v1872_v23 = vadd.f32 %v1871_v9, %v1804_v12  ;;  %v1876_v33 = vpop.f32.mrf.mxu2  ;;  %v4047_v9 = vld [vmem:[%s4589_s24 + $0x8] sm:$0xff]  ;;  %v4054_v12 = vld [vmem:[%s4589_s24 + $0x40] sm:$0xff] }
 0x2f2   : > { %2412 = vmatpush.bf16.msra.mxu3 %v4048_v8  ;;  %v4055_v13 = vld [vmem:[%s4589_s24 + $0x48] sm:$0xff] }
 0x2f3   : > { %v2092_v20 = vpack.c.bf16 %v1995_v17, %v1994_v16  ;;  %v4052_v17 = vld [vmem:[%s4589_s24 + $0x30] sm:$0xff] }
 0x2f4   : > { %v1962_v55 = vpop.f32.mrf.mxu3  ;;  %2352 = vmatpush.bf16.msra.mxu0 %v4055_v13 }
 0x2f5   : > { %v1976_v15 = vadd.f32 %v1962_v55, %v1872_v23  ;;  %2172 = vmatmul.bf16.gmra.mxu1 %v2092_v20 }
 0x2f6   : > { %2413 = vmatpush.bf16.msra.mxu3 %v4047_v9 }
 0x2f7   : > { %v1988_v1 = vadd.f32 %v4112_v63, %v1976_v15 }
 0x2f8   : > { %v1806_v25 = vpop.f32.mrf.mxu1  ;;  %2353 = vmatpush.bf16.msra.mxu0 %v4054_v12 }
 0x2f9   : > { %v1996_v26 = vmax.f32 %v1988_v1, 0.0  ;;  %v1874_v27 = vadd.f32 %v1873_v24, %v1806_v25  ;;  %v1878_v47 = vpop.f32.mrf.mxu2  ;;  %v4063_v24 = vld [vmem:[%s4589_s24 + $0x88] sm:$0xff] }
 0x2fa   : > { %2414 = vmatpush.bf16.msra.mxu3 %v4046_v28  ;;  %v4113_v28 = vld [vmem:[%s749_s21] ss:$0 sm:$0xff] }
 0x2fb   : > { %v2000_v6 = vsub.f32 %v1992_v4, %v1996_v26  ;;  %v4044_v4 = vld [vmem:[%s4741_s13] sm:$0xff] }
 0x2fc   : > { %v1964_v29 = vpop.f32.mrf.mxu3 }
 0x2fd   : > { %v1977_v30 = vadd.f32 %v1964_v29, %v1874_v27  ;;  %v2004_v19 = vand.u32 2147483647, %v2000_v6  ;;  %v4061_v29 = vld [vmem:[%s4589_s24 + $0x78] sm:$0xff] }
 0x2ff   : > { %v1989_v37 = vadd.f32 %v4112_v63, %v1977_v30  ;;  %2072 = vadd.xlane.f32.xlu2 %v2004_v19  ;;  %v4060_v30 = vld [vmem:[%s4589_s24 + $0x70] sm:$0xff] }
 0x300   : > { %v1809_v34 = vpop.f32.mrf.mxu1 }
 0x301   : > { %v1997_v35 = vmax.f32 %v1989_v37, 0.0  ;;  %v1877_v10 = vadd.f32 %v1876_v33, %v1809_v34 }
 0x303   : > { %v2093_v43 = vpack.c.bf16 %v1997_v35, %v1996_v26  ;;  %v4062_v26 = vld [vmem:[%s4589_s24 + $0x80] sm:$0xff]  ;;  %v4059_v35 = vld [vmem:[%s4589_s24 + $0x68] sm:$0xff] }
 0x304   : > { %v1967_v49 = vpop.f32.mrf.mxu3 }
 0x305   : > { %v1978_v53 = vadd.f32 %v1967_v49, %v1877_v10  ;;  %2177 = vmatmul.bf16.gmra.mxu1 %v2093_v43 }
 0x307   : > { %v1990_v40 = vadd.f32 %v4112_v63, %v1978_v53 }
 0x308   : > { %v1811_v44 = vpop.f32.mrf.mxu1 }
 0x309   : > { %v1998_v46 = vmax.f32 %v1990_v40, 0.0  ;;  %v1879_v50 = vadd.f32 %v1878_v47, %v1811_v44  ;;  %v4058_v40 = vld [vmem:[%s4589_s24 + $0x60] sm:$0xff] }
 0x30b   : > { %v2002_v52 = vsub.f32 %v1994_v16, %v1998_v46  ;;  %v4053_v16 = vld [vmem:[%s4589_s24 + $0x38] sm:$0xff]  ;;  %s757_s24 = scalar_lea.vmem %s4736_s8, %s4764_s30 }
 0x30c   : > { %v1969_v32 = vpop.f32.mrf.mxu3  ;;  %2354 = vmatpush.bf16.msra.mxu0 %v4053_v16 }
 0x30d   : > { %v1979_v38 = vadd.f32 %v1969_v32, %v1879_v50  ;;  %v2006_v57 = vand.u32 2147483647, %v2002_v52 }
 0x30f   : > { %v1991_v56 = vadd.f32 %v4112_v63, %v1979_v38  ;;  %2076 = vadd.xlane.f32.xlu1 %v2006_v57 }
 0x310   : > { %2355 = vmatpush.bf16.msra.mxu0 %v4052_v17 }
 0x311   : > { %v1999_v58 = vmax.f32 %v1991_v56, 0.0 }
 0x313   : > { %v2094_v60 = vpack.c.bf16 %v1999_v58, %v1998_v46 }
 0x314   : > { %2488 = vmatpush.bf16.msrb.mxu0 %v4063_v24 }
 0x315   : > { %2182 = vmatmul.bf16.gmra.mxu1 %v2094_v60 }
 0x318   : > { %2489 = vmatpush.bf16.msrb.mxu0 %v4062_v26  ;;  %v4637_v26 = vand.u32 7, %v4325_v22 }
 0x31a   : > { %vm2549_vm15 = vcmp.lt.s32.totalorder %v4637_v26, 4  ;;  %vm2918_vm4 = vcmp.lt.s32.totalorder %v4637_v26, 2 }
 0x31c   : > { %2490 = vmatpush.bf16.msrb.mxu0 %v4061_v29 }
 0x320   : > { %2491 = vmatpush.bf16.msrb.mxu0 %v4060_v30 }
 0x324   : > { %2492 = vmatpush.bf16.msrb.mxu0 %v4059_v35 }
 0x328   : > { %2493 = vmatpush.bf16.msrb.mxu0 %v4058_v40 }
 0x362   : > { %v2168_v61 = vpop.f32.mrf.mxu1 }
 0x36a   : > { %v2170_v45 = vpop.f32.mrf.mxu1 }
 0x36b   : > { %v2193_v63 = vpack.c.bf16 %v2170_v45, %v2168_v61 }
 0x372   : > { %v2173_v14 = vpop.f32.mrf.mxu1 }
 0x37a   : > { %v2175_v18 = vpop.f32.mrf.mxu1 }
 0x37b   : > { %v2194_v3 = vpack.c.bf16 %v2175_v18, %v2173_v14 }
 0x382   : > { %v2178_v62 = vpop.f32.mrf.mxu1 }
 0x38a   : > { %v2180_v0 = vpop.f32.mrf.mxu1 }
 0x38b   : > { %v2195_v39 = vpack.c.bf16 %v2180_v0, %v2178_v62 }
 0x392   : > { %v2183_v21 = vpop.f32.mrf.mxu1 }
 0x39a   : > { %v2185_v36 = vpop.f32.mrf.mxu1 }
 0x39b   : > { %v2196_v2 = vpack.c.bf16 %v2185_v36, %v2183_v21 }
 0x39d   : > { %2224 = vmatpush.bf16.msra.mxu2 %v2196_v2 }
 0x3a1   : > { %2225 = vmatpush.bf16.msra.mxu2 %v2195_v39 }
 0x3a5   : > { %2226 = vmatpush.bf16.msra.mxu2 %v2194_v3  ;;  %v4067_v3 = vld [vmem:[%s4744_s16 + $0x18] sm:$0xff] }
 0x3a9   : > { %2227 = vmatpush.bf16.msra.mxu2 %v2193_v63  ;;  %v4066_v63 = vld [vmem:[%s4744_s16 + $0x10] sm:$0xff] }
 0x3ac   : > { %3713 = vmatmul.msk.bf16.vlgmr.msra.gmra.mxu2 %vm2210_vm14, %v4044_v4 }
 0x3ad   : > { %2616 = vmatpush.bf16.msrb.mxu2 %v4067_v3  ;;  %v4075_v3 = vld [vmem:[%s754_s22 + $0x28] sm:$0xff] }
 0x3b1   : > { %2617 = vmatpush.bf16.msrb.mxu2 %v4066_v63  ;;  %v4078_v63 = vld [vmem:[%s754_s22 + $0x40] sm:$0xff] }
 0x3bc   : > { %3714 = vmatmul.msk.bf16.gmra.mxu2 %vm2210_vm14, %v4045_v5  ;;  %v4065_v5 = vld [vmem:[%s4744_s16 + $0x8] sm:$0xff] }
 0x3bd   : > { %2618 = vmatpush.bf16.msrb.mxu2 %v4065_v5 }
 0x3c1   : > { %2619 = vmatpush.bf16.msrb.mxu2 %v4064_v59 }
 0x3cc   : > { %3715 = vmatmul.msk.bf16.gmra.mxu2 %vm2210_vm14, %v2209_v48 }
 0x42f   : > { %v2229_v23 = vpop.f32.mrf.mxu2 }
 0x430   : > { %v2243_v20 = vpack.c.bf16 %v2229_v23, %v2229_v23 }
 0x432   : > { %v2278_v1 = vunpack.c.l.b16 %v2243_v20 }
 0x437   : > { %v2231_v55 = vpop.f32.mrf.mxu2 }
 0x438   : > { %v2244_v15 = vpack.c.bf16 %v2231_v55, %v2231_v55 }
 0x43a   : > { %v2279_v25 = vunpack.c.l.b16 %v2244_v15 }
 0x43c   : > { %v2283_v27 = vpack.c.b16 %v2279_v25, %v2278_v1 }
 0x43e   : > { %3778 = vmatmul.msk.bf16.vlgmr.msra.gmra.mxu3 %vm1604_vm12, %v2283_v27  ;;  %v2289_v33 = vshll.u32 %v2283_v27, 16  ;;  %v2287_v44 = vshrl.u32 %v2283_v27, 16  ;;  %v2439_v0 = vrot.slane %v2283_v27, 1 }
 0x43f   : > { %v2234_v6 = vpop.f32.mrf.mxu2 }
 0x440   : > { %v2245_v19 = vpack.c.bf16 %v2234_v6, %v2234_v6  ;;  %v2291_v49 = vrot.slane %v2289_v33, 1 }
 0x442   : > { %v2280_v10 = vunpack.c.l.b16 %v2245_v19  ;;  %v2292_v50 = vor.u32 %v2291_v49, %v2287_v44 }
 0x447   : > { %v2236_v37 = vpop.f32.mrf.mxu2 }
 0x448   : > { %v2246_v34 = vpack.c.bf16 %v2236_v37, %v2236_v37 }
 0x44a   : > { %v2281_v43 = vunpack.c.l.b16 %v2246_v34 }
 0x44c   : > { %v2284_v53 = vpack.c.b16 %v2281_v43, %v2280_v10  ;;  %v4642_v43 = vand.u32 7, %v4338_v42 }
 0x44e   : > { %v2294_v46 = vshll.u32 %v2284_v53, 16  ;;  %3779 = vmatmul.msk.bf16.gmra.mxu3 %vm1604_vm12, %v2284_v53  ;;  %v2298_v45 = vshrl.u32 %v2284_v53, 16  ;;  %v2440_v62 = vrot.slane %v2284_v53, 1  ;;  %vm2550_vm0 = vcmp.lt.s32.totalorder %v4642_v43, 4 }
 0x44f   : > { %v2239_v47 = vpop.f32.mrf.mxu2  ;;  %vm2919_vm5 = vcmp.lt.s32.totalorder %v4642_v43, 2  ;;  %vm3248_vm7 = vcmp.lt.s32.totalorder %v4642_v43, 1 }
 0x450   : > { %v2296_v52 = vrot.slane %v2294_v46, 1  ;;  %v2247_v32 = vpack.c.bf16 %v2239_v47, %v2239_v47  ;;  %v2441_v21 = vsel %vm1050_vm2, %v2439_v0, %v2440_v62  ;;  %v4081_v0 = vld [vmem:[%s754_s22 + $0x58] sm:$0xff] }
 0x451   : > { %2883 = vmatpush.bf16.msra.mxu2 %v4081_v0 }
 0x452   : > { %v2297_v38 = vsel %vm831_vm1, %v2292_v50, %v2296_v52  ;;  %v2282_v57 = vunpack.c.l.b16 %v2247_v32  ;;  %v2300_v14 = vor.u32 %v2298_v45, %v2296_v52  ;;  %v4073_v45 = vld [vmem:[%s754_s22 + $0x18] sm:$0xff] }
 0x453   : > { %3752 = vmatmul.msk.bf16.vlgmr.msra.gmra.mxu0 %vm1604_vm12, %v2297_v38 }
 0x454   : > { %v2285_v56 = vpack.c.b16 %v2282_v57, %v2282_v57  ;;  %v4068_v57 = vld [vmem:[%s4743_s15] sm:$0xff]  ;;  %2820 = vmatpush.bf16.msra.mxu0 %v4073_v45 }
 0x456   : > { %v2302_v60 = vshll.u32 %v2285_v56, 16  ;;  %v2442_v36 = vrot.slane %v2285_v56, 1  ;;  %v4069_v56 = vld [vmem:[%s4743_s15 + $0x8] sm:$0xff] }
 0x457   : > { %v2241_v58 = vpop.f32.mrf.mxu2 }
 0x458   : > { %v2304_v61 = vrot.slane %v2302_v60, 1  ;;  %v2443_v2 = vsel %vm1050_vm2, %v2440_v62, %v2442_v36  ;;  %v2635_v58 = vld [vmem:[%s4743_s15 + $0x10] sm:$0x1]  ;;  %v4070_v62 = vld [vmem:[%s754_s22] sm:$0xff] }
 0x459   : > { %v2647_v60 = vunpack.c.l.b16 %v2635_v58  ;;  %v4080_v36 = vld [vmem:[%s754_s22 + $0x50] sm:$0xff] }
 0x45a   : > { %v2305_v18 = vsel %vm831_vm1, %v2300_v14, %v2304_v61  ;;  %v4072_v14 = vld [vmem:[%s754_s22 + $0x10] sm:$0xff]  ;;  %2884 = vmatpush.bf16.msra.mxu2 %v4080_v36 }
 0x45b   : > { %v2650_v61 = vpack.c.b16 %v2647_v60, %v2647_v60  ;;  %2821 = vmatpush.bf16.msra.mxu0 %v4072_v14 }
 0x463   : > { %3753 = vmatmul.msk.bf16.gmra.mxu0 %vm1604_vm12, %v2305_v18  ;;  %v4071_v18 = vld [vmem:[%s754_s22 + $0x8] sm:$0xff] }
 0x464   : > { %2822 = vmatpush.bf16.msra.mxu0 %v4071_v18 }
 0x468   : > { %2823 = vmatpush.bf16.msra.mxu0 %v4070_v62 }
 0x473   : > { %3816 = vmatmul.msk.bf16.vlgmr.msrb.gmra.mxu0 %vm1604_vm12, %v2441_v21  ;;  %v4077_v21 = vld [vmem:[%s754_s22 + $0x38] sm:$0xff] }
 0x474   : > { %2773 = vmatpush.bf16.msrb.mxu1 %v4077_v21 }
 0x483   : > { %3817 = vmatmul.msk.bf16.gmra.mxu0 %vm1604_vm12, %v2443_v2  ;;  %v4076_v2 = vld [vmem:[%s754_s22 + $0x30] sm:$0xff] }
 0x484   : > { %2774 = vmatpush.bf16.msrb.mxu1 %v4076_v2 }
 0x488   : > { %2775 = vmatpush.bf16.msrb.mxu1 %v4075_v3 }
 0x4c1   : > { %v2416_v48 = vpop.f32.mrf.mxu3 }
 0x4c9   : > { %v2418_v7 = vpop.f32.mrf.mxu3 }
 0x4d0   : > { %v2357_v39 = vpop.f32.mrf.mxu0 }
 0x4d1   : > { %v2417_v8 = vadd.f32 %v2416_v48, %v2357_v39  ;;  %v2421_v17 = vpop.f32.mrf.mxu3  ;;  %v4079_v39 = vld [vmem:[%s754_s22 + $0x48] sm:$0xff] }
 0x4d2   : > { %2885 = vmatpush.bf16.msra.mxu2 %v4079_v39 }
 0x4d6   : > { %2886 = vmatpush.bf16.msra.mxu2 %v4078_v63 }
 0x4d8   : > { %v2359_v4 = vpop.f32.mrf.mxu0 }
 0x4d9   : > { %v2419_v41 = vadd.f32 %v2418_v7, %v2359_v4  ;;  %v2423_v6 = vpop.f32.mrf.mxu3  ;;  %v4074_v4 = vld [vmem:[%s754_s22 + $0x20] sm:$0xff] }
 0x4da   : > { %2776 = vmatpush.bf16.msrb.mxu1 %v4074_v4 }
 0x4e0   : > { %v2362_v31 = vpop.f32.mrf.mxu0 }
 0x4e1   : > { %v2422_v55 = vadd.f32 %v2421_v17, %v2362_v31 }
 0x4e8   : > { %v2364_v54 = vpop.f32.mrf.mxu0 }
 0x4e9   : > { %v2424_v29 = vadd.f32 %v2423_v6, %v2364_v54 }
 0x4f0   : > { %v2495_v51 = vpop.f32.mrf.mxu0 }
 0x4f1   : > { %v2505_v9 = vadd.f32 %v2495_v51, %v2417_v8 }
 0x4f3   : > { %v2513_v13 = vadd.f32 %v4113_v28, %v2505_v9 }
 0x4f5   : > { %v2517_v23 = vmax.f32 %v2513_v13, 0.0 }
 0x4f8   : > { %v2497_v11 = vpop.f32.mrf.mxu0 }
 0x4f9   : > { %v2506_v12 = vadd.f32 %v2497_v11, %v2419_v41 }
 0x4fb   : > { %v2514_v16 = vadd.f32 %v4113_v28, %v2506_v12 }
 0x4fd   : > { %v2518_v20 = vmax.f32 %v2514_v16, 0.0 }
 0x4ff   : > { %v2572_v15 = vpack.c.bf16 %v2518_v20, %v2517_v23 }
 0x500   : > { %v2500_v24 = vpop.f32.mrf.mxu0 }
 0x501   : > { %v2507_v1 = vadd.f32 %v2500_v24, %v2422_v55  ;;  %3834 = vmatmul.msk.bf16.vlgmr.msrb.gmra.mxu2 %vm2210_vm14, %v2572_v15 }
 0x503   : > { %v2515_v25 = vadd.f32 %v4113_v28, %v2507_v1 }
 0x505   : > { %v2519_v27 = vmax.f32 %v2515_v25, 0.0 }
 0x507   : > { %v2521_v30 = vsub.f32 %v2517_v23, %v2519_v27 }
 0x508   : > { %v2502_v19 = vpop.f32.mrf.mxu0 }
 0x509   : > { %v2508_v37 = vadd.f32 %v2502_v19, %v2424_v29  ;;  %v2523_v33 = vand.u32 2147483647, %v2521_v30 }
 0x50b   : > { %v2516_v34 = vadd.f32 %v4113_v28, %v2508_v37  ;;  %v2555_v35 = vsel %vm2549_vm15, %v2523_v33, 0.0 }
 0x50c   : > { %v2557_v10 = vsel %vm2210_vm14, %v2555_v35, 0.0 }
 0x50d   : > { %v2520_v49 = vmax.f32 %v2516_v34, 0.0  ;;  %2558 = vadd.xlane.f32.xlu1 %v2557_v10 }
 0x50f   : > { %v2573_v22 = vpack.c.bf16 %v2520_v49, %v2519_v27  ;;  %v2522_v53 = vsub.f32 %v2518_v20, %v2520_v49 }
 0x511   : > { %3835 = vmatmul.msk.bf16.gmra.mxu2 %vm2210_vm14, %v2573_v22  ;;  %v2524_v40 = vand.u32 2147483647, %v2522_v53 }
 0x513   : > { %v2556_v44 = vsel %vm2550_vm0, %v2524_v40, 0.0  ;;  %v4083_v40 = vld [vmem:[%s4746_s18 + $0x8] sm:$0xff] }
 0x514   : > { %v2560_v46 = vsel %vm2210_vm14, %v2556_v44, 0.0  ;;  %2971 = vmatpush.bf16.msra.mxu1 %v4083_v40  ;;  %v4082_v44 = vld [vmem:[%s4746_s18] sm:$0xff] }
 0x515   : > { %2561 = vadd.xlane.f32.xlu2 %v2560_v46 }
 0x518   : > { %2972 = vmatpush.bf16.msra.mxu1 %v4082_v44 }
 0x584   : > { %v2621_v47 = vpop.f32.mrf.mxu2 }
 0x58c   : > { %v2623_v50 = vpop.f32.mrf.mxu2 }
 0x58d   : > { %v2636_v38 = vpack.c.bf16 %v2623_v50, %v2621_v47 }
 0x594   : > { %v2626_v52 = vpop.f32.mrf.mxu2 }
 0x59c   : > { %v2628_v32 = vpop.f32.mrf.mxu2 }
 0x59d   : > { %v2637_v42 = vpack.c.bf16 %v2628_v32, %v2626_v52 }
 0x59f   : > { %2667 = vmatpush.bf16.msrb.mxu3 %v2637_v42 }
 0x5a3   : > { %2668 = vmatpush.bf16.msrb.mxu3 %v2636_v38 }
 0x5a6   : > { %3844 = vmatmul.msk.bf16.vlgmr.msrb.gmra.mxu3 %vm2651_vm3, %v4068_v57  ;;  %v4114_v57 = vld [vmem:[%s757_s24] ss:$0 sm:$0xff] }
 0x5b6   : > { %3845 = vmatmul.msk.bf16.gmra.mxu3 %vm2651_vm3, %v4069_v56 }
 0x5c6   : > { %3846 = vmatmul.msk.bf16.gmra.mxu3 %vm2651_vm3, %v2650_v61 }
 0x629   : > { %v2670_v5 = vpop.f32.mrf.mxu3 }
 0x62a   : > { %v2684_v59 = vpack.c.bf16 %v2670_v5, %v2670_v5 }
 0x62c   : > { %v2711_v54 = vunpack.c.l.b16 %v2684_v59 }
 0x631   : > { %v2672_v31 = vpop.f32.mrf.mxu3 }
 0x632   : > { %v2685_v48 = vpack.c.bf16 %v2672_v31, %v2672_v31 }
 0x634   : > { %v2712_v51 = vunpack.c.l.b16 %v2685_v48 }
 0x636   : > { %v2716_v7 = vpack.c.b16 %v2712_v51, %v2711_v54 }
 0x638   : > { %3889 = vmatmul.msk.bf16.vlgmr.msra.gmra.mxu0 %vm2210_vm14, %v2716_v7  ;;  %v2722_v41 = vshll.u32 %v2716_v7, 16  ;;  %v2720_v23 = vshrl.u32 %v2716_v7, 16  ;;  %v2844_v20 = vrot.slane %v2716_v7, 1 }
 0x639   : > { %v2675_v8 = vpop.f32.mrf.mxu3 }
 0x63a   : > { %v2686_v9 = vpack.c.bf16 %v2675_v8, %v2675_v8  ;;  %v2724_v16 = vrot.slane %v2722_v41, 1 }
 0x63c   : > { %v2713_v13 = vunpack.c.l.b16 %v2686_v9  ;;  %v2725_v27 = vor.u32 %v2724_v16, %v2720_v23 }
 0x641   : > { %v2677_v28 = vpop.f32.mrf.mxu3 }
 0x642   : > { %v2687_v11 = vpack.c.bf16 %v2677_v28, %v2677_v28 }
 0x644   : > { %v2714_v12 = vunpack.c.l.b16 %v2687_v11 }
 0x646   : > { %v2717_v17 = vpack.c.b16 %v2714_v12, %v2713_v13 }
 0x648   : > { %v2727_v55 = vshll.u32 %v2717_v17, 16  ;;  %v2845_v15 = vrot.slane %v2717_v17, 1  ;;  %3890 = vmatmul.msk.bf16.gmra.mxu0 %vm2210_vm14, %v2717_v17  ;;  %v2731_v10 = vshrl.u32 %v2717_v17, 16 }
 0x649   : > { %v2680_v24 = vpop.f32.mrf.mxu3 }
 0x64a   : > { %v2729_v1 = vrot.slane %v2727_v55, 1  ;;  %v2846_v25 = vsel %vm1050_vm2, %v2844_v20, %v2845_v15  ;;  %v2688_v6 = vpack.c.bf16 %v2680_v24, %v2680_v24 }
 0x64b   : > { %3915 = vmatmul.msk.bf16.vlgmr.msra.gmra.mxu2 %vm2210_vm14, %v2846_v25  ;;  %v4085_v25 = vld [vmem:[%s4745_s17 + $0x8] sm:$0xff] }
 0x64c   : > { %v2730_v29 = vsel %vm831_vm1, %v2725_v27, %v2729_v1  ;;  %v2715_v30 = vunpack.c.l.b16 %v2688_v6  ;;  %v2733_v22 = vor.u32 %v2731_v10, %v2729_v1  ;;  %v4084_v1 = vld [vmem:[%s4745_s17] sm:$0xff]  ;;  %v2988_v27 = vld [vmem:[%s4745_s17 + $0x10] sm:$0x1] }
 0x64d   : > { %3871 = vmatmul.msk.bf16.vlgmr.msrb.gmra.mxu1 %vm2210_vm14, %v2730_v29  ;;  %v3000_v6 = vunpack.c.l.b16 %v2988_v27  ;;  %v4090_v10 = vld [vmem:[%s762_s20 + $0x20] sm:$0xff] }
 0x64e   : > { %v2718_v19 = vpack.c.b16 %v2715_v30, %v2715_v30  ;;  %v4088_v30 = vld [vmem:[%s762_s20 + $0x10] sm:$0xff] }
 0x64f   : > { %v3003_v29 = vpack.c.b16 %v3000_v6, %v3000_v6  ;;  %3158 = vmatpush.bf16.msrb.mxu2 %v4088_v30 }
 0x650   : > { %v2735_v33 = vshll.u32 %v2718_v19, 16  ;;  %v2847_v34 = vrot.slane %v2718_v19, 1  ;;  %v4087_v19 = vld [vmem:[%s762_s20 + $0x8] sm:$0xff] }
 0x651   : > { %v2682_v37 = vpop.f32.mrf.mxu3 }
 0x652   : > { %v2737_v35 = vrot.slane %v2735_v33, 1  ;;  %v2848_v49 = vsel %vm1050_vm2, %v2845_v15, %v2847_v34  ;;  %v4086_v37 = vld [vmem:[%s762_s20] sm:$0xff]  ;;  %v4091_v34 = vld [vmem:[%s762_s20 + $0x28] sm:$0xff] }
 0x653   : > { %3159 = vmatpush.bf16.msrb.mxu2 %v4087_v19  ;;  %v4094_v33 = vld [vmem:[%s762_s20 + $0x40] sm:$0xff]  ;;  %3117 = vmatpush.bf16.msrb.mxu0 %v4091_v34 }
 0x654   : > { %v2738_v53 = vsel %vm831_vm1, %v2733_v22, %v2737_v35  ;;  %3213 = vmatpush.bf16.msrb.mxu1 %v4094_v33  ;;  %v4093_v35 = vld [vmem:[%s762_s20 + $0x38] sm:$0xff] }
 0x655   : > { %v4089_v22 = vld [vmem:[%s762_s20 + $0x18] sm:$0xff] }
 0x657   : > { %3160 = vmatpush.bf16.msrb.mxu2 %v4086_v37  ;;  %3118 = vmatpush.bf16.msrb.mxu0 %v4090_v10 }
 0x658   : > { %3214 = vmatpush.bf16.msrb.mxu1 %v4093_v35 }
 0x65b   : > { %3916 = vmatmul.msk.bf16.gmra.mxu2 %vm2210_vm14, %v2848_v49  ;;  %v4092_v49 = vld [vmem:[%s762_s20 + $0x30] sm:$0xff]  ;;  %3119 = vmatpush.bf16.msrb.mxu0 %v4089_v22 }
 0x65c   : > { %3215 = vmatpush.bf16.msrb.mxu1 %v4092_v49 }
 0x65d   : > { %3872 = vmatmul.msk.bf16.gmra.mxu1 %vm2210_vm14, %v2738_v53 }
 0x6b5   : > { %v2825_v46 = vpop.f32.mrf.mxu0 }
 0x6bd   : > { %v2827_v52 = vpop.f32.mrf.mxu0 }
 0x6c5   : > { %v2830_v14 = vpop.f32.mrf.mxu0 }
 0x6ca   : > { %v2778_v47 = vpop.f32.mrf.mxu1 }
 0x6cb   : > { %v2826_v32 = vadd.f32 %v2825_v46, %v2778_v47 }
 0x6cd   : > { %v2832_v5 = vpop.f32.mrf.mxu0 }
 0x6ce   : > { %v2888_v50 = vpop.f32.mrf.mxu2 }
 0x6cf   : > { %v2898_v38 = vadd.f32 %v2888_v50, %v2826_v32 }
 0x6d1   : > { %v2906_v60 = vadd.f32 %v4114_v57, %v2898_v38 }
 0x6d2   : > { %v2780_v42 = vpop.f32.mrf.mxu1 }
 0x6d3   : > { %v2828_v56 = vadd.f32 %v2827_v52, %v2780_v42  ;;  %v2910_v62 = vmax.f32 %v2906_v60, 0.0 }
 0x6d6   : > { %v2890_v58 = vpop.f32.mrf.mxu2 }
 0x6d7   : > { %v2899_v61 = vadd.f32 %v2890_v58, %v2828_v56 }
 0x6d9   : > { %v2907_v45 = vadd.f32 %v4114_v57, %v2899_v61 }
 0x6da   : > { %v2783_v18 = vpop.f32.mrf.mxu1 }
 0x6db   : > { %v2911_v0 = vmax.f32 %v2907_v45, 0.0  ;;  %v2831_v36 = vadd.f32 %v2830_v14, %v2783_v18 }
 0x6dd   : > { %v2941_v21 = vpack.c.bf16 %v2911_v0, %v2910_v62 }
 0x6de   : > { %v2893_v2 = vpop.f32.mrf.mxu2 }
 0x6df   : > { %v2900_v39 = vadd.f32 %v2893_v2, %v2831_v36  ;;  %3925 = vmatmul.msk.bf16.vlgmr.msra.gmra.mxu1 %vm2651_vm3, %v2941_v21 }
 0x6e1   : > { %v2908_v3 = vadd.f32 %v4114_v57, %v2900_v39 }
 0x6e2   : > { %v2785_v63 = vpop.f32.mrf.mxu1 }
 0x6e3   : > { %v2912_v4 = vmax.f32 %v2908_v3, 0.0  ;;  %v2833_v59 = vadd.f32 %v2832_v5, %v2785_v63 }
 0x6e5   : > { %v2914_v31 = vsub.f32 %v2910_v62, %v2912_v4 }
 0x6e6   : > { %v2895_v48 = vpop.f32.mrf.mxu2 }
 0x6e7   : > { %v2901_v54 = vadd.f32 %v2895_v48, %v2833_v59  ;;  %v2916_v51 = vand.u32 2147483647, %v2914_v31 }
 0x6e9   : > { %v2909_v7 = vadd.f32 %v4114_v57, %v2901_v54  ;;  %v2924_v8 = vsel %vm2918_vm4, %v2916_v51, 0.0 }
 0x6ea   : > { %v2926_v9 = vsel %vm2651_vm3, %v2924_v8, 0.0 }
 0x6eb   : > { %v2913_v28 = vmax.f32 %v2909_v7, 0.0  ;;  %2927 = vadd.xlane.f32.xlu0 %v2926_v9 }
 0x6ed   : > { %v2942_v41 = vpack.c.bf16 %v2913_v28, %v2912_v4  ;;  %v2915_v11 = vsub.f32 %v2911_v0, %v2913_v28 }
 0x6ef   : > { %3926 = vmatmul.msk.bf16.gmra.mxu1 %vm2651_vm3, %v2942_v41  ;;  %v2917_v13 = vand.u32 2147483647, %v2915_v11 }
 0x6f1   : > { %v2925_v12 = vsel %vm2919_vm5, %v2917_v13, 0.0 }
 0x6f2   : > { %v2929_v16 = vsel %vm2651_vm3, %v2925_v12, 0.0 }
 0x6f3   : > { %2930 = vadd.xlane.f32.xlu1 %v2929_v16 }
 0x75c   : > { %v2974_v17 = vpop.f32.mrf.mxu1 }
 0x764   : > { %v2976_v23 = vpop.f32.mrf.mxu1 }
 0x765   : > { %v2989_v24 = vpack.c.bf16 %v2976_v23, %v2974_v17 }
 0x76c   : > { %v2979_v20 = vpop.f32.mrf.mxu1 }
 0x774   : > { %v2981_v55 = vpop.f32.mrf.mxu1 }
 0x775   : > { %v2990_v15 = vpack.c.bf16 %v2981_v55, %v2979_v20  ;;  %v4115_v55 = vld [vmem:[%s765_s26] ss:$0 sm:$0xff] }
 0x777   : > { %3019 = vmatpush.bf16.msra.mxu3 %v2990_v15 }
 0x77b   : > { %3020 = vmatpush.bf16.msra.mxu3 %v2989_v24 }
 0x77e   : > { %3935 = vmatmul.msk.bf16.vlgmr.msra.gmra.mxu3 %vm2651_vm3, %v4084_v1 }
 0x78e   : > { %3936 = vmatmul.msk.bf16.gmra.mxu3 %vm2651_vm3, %v4085_v25 }
 0x79e   : > { %3937 = vmatmul.msk.bf16.gmra.mxu3 %vm2651_vm3, %v3003_v29 }
 0x801   : > { %v3022_v53 = vpop.f32.mrf.mxu3 }
 0x802   : > { %v3036_v40 = vpack.c.bf16 %v3022_v53, %v3022_v53 }
 0x804   : > { %v3059_v47 = vunpack.c.l.b16 %v3036_v40 }
 0x809   : > { %v3024_v44 = vpop.f32.mrf.mxu3 }
 0x80a   : > { %v3037_v46 = vpack.c.bf16 %v3024_v44, %v3024_v44 }
 0x80c   : > { %v3060_v50 = vunpack.c.l.b16 %v3037_v46 }
 0x80e   : > { %v3064_v52 = vpack.c.b16 %v3060_v50, %v3059_v47 }
 0x810   : > { %3970 = vmatmul.msk.bf16.vlgmr.msrb.gmra.mxu2 %vm3105_vm6, %v3064_v52  ;;  %v3070_v57 = vshll.u32 %v3064_v52, 16  ;;  %v3068_v14 = vshrl.u32 %v3064_v52, 16  ;;  %v3179_v18 = vrot.slane %v3064_v52, 1 }
 0x811   : > { %v3027_v32 = vpop.f32.mrf.mxu3 }
 0x812   : > { %v3038_v42 = vpack.c.bf16 %v3027_v32, %v3027_v32  ;;  %v3072_v61 = vrot.slane %v3070_v57, 1 }
 0x814   : > { %v3061_v58 = vunpack.c.l.b16 %v3038_v42  ;;  %v3073_v2 = vor.u32 %v3072_v61, %v3068_v14 }
 0x819   : > { %v3029_v38 = vpop.f32.mrf.mxu3 }
 0x81a   : > { %v3039_v56 = vpack.c.bf16 %v3029_v38, %v3029_v38 }
 0x81c   : > { %v3062_v60 = vunpack.c.l.b16 %v3039_v56  ;;  %v2079_v56 = vpop.xlane.xlu0 %2078 }
 0x81e   : > { %v3065_v45 = vpack.c.b16 %v3062_v60, %v3061_v58  ;;  %v1437_v58 = vpop.xlane.xlu1 %1436 }
 0x820   : > { %v3075_v62 = vshll.u32 %v3065_v45, 16  ;;  %v3180_v0 = vrot.slane %v3065_v45, 1  ;;  %3971 = vmatmul.msk.bf16.gmra.mxu2 %vm3105_vm6, %v3065_v45  ;;  %v3079_v51 = vshrl.u32 %v3065_v45, 16 }
 0x821   : > { %v3032_v21 = vpop.f32.mrf.mxu3 }
 0x822   : > { %v3077_v36 = vrot.slane %v3075_v62, 1  ;;  %v3181_v39 = vsel %vm1050_vm2, %v3179_v18, %v3180_v0  ;;  %v3040_v3 = vpack.c.bf16 %v3032_v21, %v3032_v21 }
 0x823   : > { %3990 = vmatmul.msk.bf16.vlgmr.msrb.gmra.mxu1 %vm3105_vm6, %v3181_v39 }
 0x824   : > { %v3078_v63 = vsel %vm831_vm1, %v3073_v2, %v3077_v36  ;;  %v3063_v4 = vunpack.c.l.b16 %v3040_v3  ;;  %v3081_v7 = vor.u32 %v3079_v51, %v3077_v36  ;;  %v1433_v60 = vpop.xlane.xlu0 %1432 }
 0x825   : > { %3956 = vmatmul.msk.bf16.vlgmr.msrb.gmra.mxu0 %vm3105_vm6, %v3078_v63 }
 0x826   : > { %v3066_v5 = vpack.c.b16 %v3063_v4, %v3063_v4  ;;  %v1439_v61 = vpop.xlane.xlu1 %1438 }
 0x828   : > { %v3083_v31 = vshll.u32 %v3066_v5, 16  ;;  %v3182_v48 = vrot.slane %v3066_v5, 1 }
 0x829   : > { %v3034_v59 = vpop.f32.mrf.mxu3 }
 0x82a   : > { %v3085_v54 = vrot.slane %v3083_v31, 1  ;;  %v3183_v8 = vsel %vm1050_vm2, %v3180_v0, %v3182_v48  ;;  %vm3255_vm2 = vcmask 130048  }
 0x82c   : > { %v3086_v9 = vsel %vm831_vm1, %v3081_v7, %v3085_v54  ;;  %vm3247_vm1 = vcmp.lt.s32.totalorder %v4637_v26, 1  ;;  %v2075_v26 = vpop.xlane.xlu2 %2074  ;;  %v1435_v18 = vpop.xlane.xlu0 %1434 }
 0x82d   : > { %v1444_v21 = vadd.f32 %v1435_v18, %v1433_v60 }
 0x82e   : > { %v2077_v14 = vpop.xlane.xlu1 %2076 }
 0x82f   : > { %v1445_v39 = vadd.f32 %v1444_v21, %v1437_v58 }
 0x831   : > { %v1446_v43 = vadd.f32 %v1445_v39, %v1439_v61 }
 0x833   : > { %3991 = vmatmul.msk.bf16.gmra.mxu1 %vm3105_vm6, %v3183_v8 }
 0x834   : > { %v1443_v45 = vpop.xlane.xlu2 %1442  ;;  %v1441_v2 = vpop.xlane.xlu0 %1440 }
 0x835   : > { %3957 = vmatmul.msk.bf16.gmra.mxu0 %vm3105_vm6, %v3086_v9  ;;  %v1447_v4 = vadd.f32 %v1446_v43, %v1441_v2 }
 0x836   : > { %v2559_v0 = vpop.xlane.xlu1 %2558 }
 0x837   : > { %v1448_v31 = vadd.f32 %v1447_v4, %v1443_v45 }
 0x839   : > { %v1449_v8 = vrot.slane %v1448_v31, 4 }
 0x83c   : > { %v2073_v62 = vpop.xlane.xlu2 %2072  ;;  %v2928_v54 = vpop.xlane.xlu0 %2927 }
 0x83d   : > { %v2080_v36 = vadd.f32 %v2075_v26, %v2073_v62 }
 0x83e   : > { %v2931_v59 = vpop.xlane.xlu1 %2930 }
 0x83f   : > { %v2081_v3 = vadd.f32 %v2080_v36, %v2077_v14  ;;  %v2932_v7 = vadd.f32 %v2931_v59, %v2928_v54 }
 0x841   : > { %v2082_v5 = vadd.f32 %v2081_v3, %v2079_v56 }
 0x843   : > { %v2083_v51 = vrot.slane %v2082_v5, 4 }
 0x844   : > { %v2562_v63 = vpop.xlane.xlu2 %2561 }
 0x845   : > { %v2563_v48 = vadd.f32 %v2562_v63, %v2559_v0 }
 0x847   : > { %v2564_v9 = vrot.slane %v2563_v48, 4 }
 0x893   : > { %v3162_v28 = vpop.f32.mrf.mxu2 }
 0x89b   : > { %v3164_v13 = vpop.f32.mrf.mxu2 }
 0x8a0   : > { %v3217_v41 = vpop.f32.mrf.mxu1 }
 0x8a2   : > { %v3121_v11 = vpop.f32.mrf.mxu0 }
 0x8a3   : > { %v3163_v17 = vadd.f32 %v3162_v28, %v3121_v11  ;;  %v3167_v23 = vpop.f32.mrf.mxu2  ;;  %v2084_v28 = vadd.f32 %v2083_v51, %v2082_v5  ;;  %v1450_v11 = vadd.f32 %v1449_v8, %v1448_v31 }
 0x8a5   : > { %v3227_v20 = vadd.f32 %v3217_v41, %v3163_v17  ;;  %v2933_v41 = vrot.slane %v2932_v7, 4  ;;  %v1451_v17 = vrot.slane %v1450_v11, 2 }
 0x8a7   : > { %v3235_v25 = vadd.f32 %v4115_v55, %v3227_v20 }
 0x8a8   : > { %v3219_v12 = vpop.f32.mrf.mxu1 }
 0x8a9   : > { %v3239_v30 = vmax.f32 %v3235_v25, 0.0 }
 0x8aa   : > { %v3123_v16 = vpop.f32.mrf.mxu0 }
 0x8ab   : > { %v3165_v27 = vadd.f32 %v3164_v13, %v3123_v16  ;;  %v3169_v34 = vpop.f32.mrf.mxu2  ;;  %v2565_v13 = vadd.f32 %v2564_v9, %v2563_v48  ;;  %v2934_v16 = vadd.f32 %v2933_v41, %v2932_v7 }
 0x8ad   : > { %v3228_v19 = vadd.f32 %v3219_v12, %v3165_v27  ;;  %v2085_v12 = vrot.slane %v2084_v28, 2 }
 0x8af   : > { %v3236_v22 = vadd.f32 %v4115_v55, %v3228_v19  ;;  %v2086_v20 = vadd.f32 %v2085_v12, %v2084_v28 }
 0x8b0   : > { %v3222_v24 = vpop.f32.mrf.mxu1 }
 0x8b1   : > { %v3240_v50 = vmax.f32 %v3236_v22, 0.0 }
 0x8b2   : > { %v3126_v15 = vpop.f32.mrf.mxu0 }
 0x8b3   : > { %v3168_v1 = vadd.f32 %v3167_v23, %v3126_v15  ;;  %v2566_v23 = vrot.slane %v2565_v13, 2  ;;  %v1452_v15 = vadd.f32 %v1451_v17, %v1450_v11 }
 0x8b5   : > { %v3229_v6 = vadd.f32 %v3222_v24, %v3168_v1  ;;  %v2567_v24 = vadd.f32 %v2566_v23, %v2565_v13  ;;  %v2087_v1 = vrot.slane %v2086_v20, 1 }
 0x8b7   : > { %v3237_v29 = vadd.f32 %v4115_v55, %v3229_v6 }
 0x8b8   : > { %v3224_v49 = vpop.f32.mrf.mxu1 }
 0x8b9   : > { %v3241_v37 = vmax.f32 %v3237_v29, 0.0  ;;  %v1453_v29 = vrot.slane %v1452_v15, 1 }
 0x8ba   : > { %v3128_v33 = vpop.f32.mrf.mxu0 }
 0x8bb   : > { %v3170_v35 = vadd.f32 %v3169_v34, %v3128_v33  ;;  %v3243_v10 = vsub.f32 %v3239_v30, %v3241_v37  ;;  %v2568_v30 = vrot.slane %v2567_v24, 1  ;;  %v2088_v37 = vadd.f32 %v2087_v1, %v2086_v20 }
 0x8bd   : > { %v3230_v53 = vadd.f32 %v3224_v49, %v3170_v35  ;;  %v3245_v40 = vand.u32 2147483647, %v3243_v10  ;;  %v1454_v35 = vadd.f32 %v1453_v29, %v1452_v15  ;;  %v2569_v10 = vadd.f32 %v2568_v30, %v2567_v24 }
 0x8be   : > { %v2089_v22 = vmul.f32 3.0517578e-05, %v2088_v37 }
 0x8bf   : > { %v3238_v44 = vadd.f32 %v4115_v55, %v3230_v53  ;;  %v3253_v46 = vsel %vm3247_vm1, %v3245_v40, 0.0  ;;  %v2935_v55 = vrot.slane %v2934_v16, 2 }
 0x8c0   : > { %v3256_v47 = vsel %vm3255_vm2, %v3253_v46, 0.0  ;;  %v2570_v46 = vmul.f32 0.00024414063, %v2569_v10 }
 0x8c1   : > { %v3242_v52 = vmax.f32 %v3238_v44, 0.0  ;;  %3257 = vadd.xlane.f32.xlu2 %v3256_v47  ;;  %v2936_v25 = vadd.f32 %v2935_v55, %v2934_v16  ;;  %v1455_v44 = vmul.f32 7.6293945e-06, %v1454_v35 }
 0x8c3   : > { %v3244_v32 = vsub.f32 %v3240_v50, %v3242_v52  ;;  %v2937_v33 = vrot.slane %v2936_v25, 1  ;;  %v2090_v50 = vadd.f32 %v2089_v22, %v1455_v44 }
 0x8c5   : > { %v3246_v42 = vand.u32 2147483647, %v3244_v32  ;;  %v2938_v53 = vadd.f32 %v2937_v33, %v2936_v25 }
 0x8c7   : > { %v3254_v38 = vsel %vm3248_vm7, %v3246_v42, 0.0  ;;  %v2939_v52 = vmul.f32 0.001953125, %v2938_v53  ;;  %v2571_v42 = vadd.f32 %v2570_v46, %v2090_v50 }
 0x8c8   : > { %v3259_v57 = vsel %vm3255_vm2, %v3254_v38, 0.0 }
 0x8c9   : > { %3260 = vadd.xlane.f32.xlu0 %v3259_v57  ;;  %v2940_v57 = vadd.f32 %v2939_v52, %v2571_v42 }
 0x934   : > { %v3258_v6 = vpop.xlane.xlu2 %3257 }
 0x93c   : > { %v3261_v27 = vpop.xlane.xlu0 %3260 }
 0x93d   : > { %v3262_v19 = vadd.f32 %v3261_v27, %v3258_v6 }
 0x93f   : > { %v3263_v34 = vrot.slane %v3262_v19, 4 }
 0x941   : > { %v3264_v49 = vadd.f32 %v3263_v34, %v3262_v19 }
 0x943   : > { %v3265_v40 = vrot.slane %v3264_v49, 2 }
 0x945   : > { %v3266_v47 = vadd.f32 %v3265_v40, %v3264_v49 }
 0x947   : > { %v3267_v32 = vrot.slane %v3266_v47, 1 }
 0x949   : > { %v3268_v38 = vadd.f32 %v3267_v32, %v3266_v47 }
 0x94b   : > { %v3269_v56 = vmul.f32 0.03125, %v3268_v38 }
 0x94d   : > { %v3270_v58 = vadd.f32 %v3269_v56, %v2940_v57 }
 0x94f   : > { %3272 = vst.msk [vmem:[%s768_s1] sm:$0x1] %vm3271_vm8, %v3270_v58 }
 0x950 PF: > { %s29_s0 = sadd.s32 1, %s4122_s0  }
 0x951   : > { %p26_p4 = scmp.ge.s32.totalorder %s29_s0, 4  }
 0x953   :  { %28 = sbr.rel (!%p26_p4) target bundleno = 5 (0x5), region = 166 }

</bundles_post_ra>
